<compile_context>
chip_gen: v7x
topology: tpu7x:2x2x1
jax: 0.10.0
libtpu: 0.0.40
codegen_flags: <defaults>
</compile_context>

<pallas_src>
import functools

import jax
import jax.numpy as jnp
from jax.experimental import pallas as pl
from jax.experimental.pallas import tpu as pltpu


# ----------------------------------------------------------------------------
# Kernel factory: specialized on the (static) post-order tree shapes
# ----------------------------------------------------------------------------
@functools.lru_cache(maxsize=64)
def _make_tree_pair_similarity_kernel(children0, children1, root0, root1, n_nodes, mem_dim):
    """children0/children1: tuples (len n_nodes) of tuples of child node ids (children < parent)."""
    m = mem_dim
    m3 = 3 * m

    def kernel(node_x_ref, wxa_ref, bxa_ref, wha_ref,
               whs_ref, bhs_ref, wp_ref, bp_ref, out_ref):
        # Hoisted x-path projection for all nodes of both trees (rows interleaved:
        # row 2t = tree0 node t, row 2t+1 = tree1 node t).  Biases folded once:
        #   cols [0:3m)  = x @ ioux_w + (ioux_b + iouh_b)
        #   cols [3m:4m) = x @ fx_w   + (fx_b  + fh_b)
        x_proj = jnp.dot(node_x_ref[...], wxa_ref[...],
                         preferred_element_type=jnp.float32) + bxa_ref[...]
        wha = wha_ref[...]                                   # (m, 4m) = [iouh_w | fh_w]

        def tree_sum(a, lo, hi, width):
            if hi > lo:
                return jnp.sum(a[lo:hi], axis=0, keepdims=True)
            return jnp.zeros((1, width), jnp.float32)

        # Register-resident states: row 0 = tree0, row 1 = tree1.
        cs = [None] * n_nodes                                # each (2, m)
        hs = [None] * n_nodes

        for t in range(n_nodes):
            ch0, ch1 = children0[t], children1[t]
            k0, k1 = len(ch0), len(ch1)
            kt = k0 + k1
            xp = x_proj[2 * t:2 * t + 2, :]                  # (2, 4m) one lane-dense slice

            if kt > 0:
                # Single h-path matmul over the stacked children of BOTH trees:
                # (kt, m) @ (m, 4m); cols [0:3m) feed iou, cols [3m:4m) feed the f gates.
                ch_h = [hs[c][0:1, :] for c in ch0] + [hs[c][1:2, :] for c in ch1]
                ch_c = [cs[c][0:1, :] for c in ch0] + [cs[c][1:2, :] for c in ch1]
                child_h = ch_h[0] if kt == 1 else jnp.concatenate(ch_h, axis=0)
                child_c = ch_c[0] if kt == 1 else jnp.concatenate(ch_c, axis=0)
                hp = jnp.dot(child_h, wha, preferred_element_type=jnp.float32)   # (kt, 4m)

                # sum_k (child_h_k @ iouh_w) == child_h_sum @ iouh_w, per tree.
                iou = xp[:, :m3] + jnp.concatenate(
                    [tree_sum(hp[:, :m3], 0, k0, m3),
                     tree_sum(hp[:, :m3], k0, kt, m3)], axis=0)                  # (2, 3m)

                # Forget gates of all children of both trees, one EUP dispatch.
                fpre_parts = []
                if k0:
                    fpre_parts.append(hp[:k0, m3:] + xp[0:1, m3:])
                if k1:
                    fpre_parts.append(hp[k0:, m3:] + xp[1:2, m3:])
                fpre = (fpre_parts[0] if len(fpre_parts) == 1
                        else jnp.concatenate(fpre_parts, axis=0))                # (kt, m)
                f = jax.nn.sigmoid(fpre)
                fc = f * child_c
                fcsum = jnp.concatenate(
                    [tree_sum(fc, 0, k0, m),
                     tree_sum(fc, k0, kt, m)], axis=0)                           # (2, m)
            else:
                iou = xp[:, :m3]
                fcsum = None

            io = jax.nn.sigmoid(iou[:, :2 * m])              # (2, 2m): i and o in one dispatch
            i_g, o_g = io[:, :m], io[:, m:]
            u_g = jnp.tanh(iou[:, 2 * m:])                   # (2, m)
            c = i_g * u_g if fcsum is None else i_g * u_g + fcsum
            h = o_g * jnp.tanh(c)
            cs[t], hs[t] = c, h

        # ---- DASimilarity head on the two root cell states (stay in registers) ----
        # TODO(synk): F.dropout(p=0.2) is training-only; eval-mode forward is identity.
        l = cs[root0][0:1, :]
        r = cs[root1][1:2, :]
        vec = jnp.concatenate([l * r, jnp.abs(l - r)], axis=1)                   # (1, 2m)
        hid = jax.nn.sigmoid(
            jnp.dot(vec, whs_ref[...], preferred_element_type=jnp.float32) + bhs_ref[...])
        logits = jnp.dot(hid, wp_ref[...], preferred_element_type=jnp.float32) + bp_ref[...]
        s = logits - jnp.max(logits, axis=1, keepdims=True)
        out_ref[...] = s - jnp.log(jnp.sum(jnp.exp(s), axis=1, keepdims=True))

    return kernel


# ----------------------------------------------------------------------------
# Host wrapper: linearize trees, fold weights, launch the single fused kernel
# ----------------------------------------------------------------------------
def similarity_tree_lstm_forward(ltree, ltokens, rtree, rtokens, params):
    """ltree/rtree = (children_lists, node_word_idx) in post-order (root last)."""
    emb = params["emb"]
    in_dim = emb.shape[1]
    mem = params["fh_w"].shape[1]
    num_classes = params["wp_w"].shape[1]

    l_children, l_idx = ltree
    r_children, r_idx = rtree
    Nl, Nr = len(l_children), len(r_children)
    N = max(Nl, Nr)                   # lockstep length (shorter tree padded with dummy leaves)

    def pad_children(children_lists):
        padded = [tuple(ch) for ch in children_lists] + [()] * (N - len(children_lists))
        for i, ch in enumerate(padded):
            assert all(c < i for c in ch)        # post-order: children before parents
        return tuple(padded)

    ch0 = pad_children(l_children)
    ch1 = pad_children(r_children)

    # --- per-node inputs, interleaved: row 2t = tree0 node t, row 2t+1 = tree1 node t ---
    def node_rows(tokens, node_word_idx, n_real):
        lut = emb[tokens]                          # embedding lookup (host-side glue)
        rows = []
        for t in range(N):
            if t < n_real and node_word_idx[t] < tokens.shape[0]:
                rows.append(lut[node_word_idx[t]])
            else:                                  # tree.idx >= len(inputs) or padding node
                rows.append(jnp.zeros((in_dim,), jnp.float32))
        return rows

    rows0 = node_rows(ltokens, l_idx, Nl)
    rows1 = node_rows(rtokens, r_idx, Nr)
    node_x = jnp.stack([rows0[t] if j == 0 else rows1[t]
                        for t in range(N) for j in range(2)], axis=0)     # (2N, in_dim)

    # --- fold TreeLSTM weights into lane-dense (., 4*mem) matrices (one-time transform) ---
    wx_all = jnp.concatenate([params["ioux_w"], params["fx_w"]], axis=1)           # (in, 4m)
    bx_all = jnp.concatenate([params["ioux_b"] + params["iouh_b"],
                              params["fx_b"] + params["fh_b"]], axis=1)             # (1, 4m)
    wh_all = jnp.concatenate([params["iouh_w"], params["fh_w"]], axis=1)            # (m, 4m)

    kernel = _make_tree_pair_similarity_kernel(ch0, ch1, Nl - 1, Nr - 1, N, mem)
    vmem = pl.BlockSpec(memory_space=pltpu.MemorySpace.VMEM)
    return pl.pallas_call(
        kernel,
        out_shape=jax.ShapeDtypeStruct((1, num_classes), jnp.float32),
        in_specs=[vmem] * 8,
        out_specs=vmem,
        compiler_params=pltpu.CompilerParams(vmem_limit_bytes=32 * 1024 * 1024),
    )(node_x, wx_all, bx_all, wh_all,
      params["wh_w"], params["wh_b"], params["wp_w"], params["wp_b"])


# ----------------------------------------------------------------------------
# Pure-JAX reference (mirrors the PyTorch modules exactly, un-fused weights)
# ----------------------------------------------------------------------------
def _ref_tree(children_lists, node_x, p):
    N = node_x.shape[0]
    mem = p["fh_w"].shape[1]
    cs, hs = [None] * N, [None] * N
    for t in range(N):
        x = node_x[t]
        ch = children_lists[t]
        if len(ch) == 0:
            child_c = jnp.zeros((1, mem), jnp.float32)
            child_h = jnp.zeros((1, mem), jnp.float32)
        else:
            child_c = jnp.concatenate([cs[c] for c in ch], axis=0)
            child_h = jnp.concatenate([hs[c] for c in ch], axis=0)
        child_h_sum = jnp.sum(child_h, axis=0, keepdims=True)
        iou = x @ p["ioux_w"] + p["ioux_b"] + child_h_sum @ p["iouh_w"] + p["iouh_b"]
        i = jax.nn.sigmoid(iou[:, :mem])
        o = jax.nn.sigmoid(iou[:, mem:2 * mem])
        u = jnp.tanh(iou[:, 2 * mem:])
        f = jax.nn.sigmoid(child_h @ p["fh_w"] + p["fh_b"] + x @ p["fx_w"] + p["fx_b"])
        c = i * u + jnp.sum(f * child_c, axis=0, keepdims=True)
        h = o * jnp.tanh(c)
        cs[t], hs[t] = c, h
    return cs[N - 1], hs[N - 1]


def _ref_forward(ltree, ltokens, rtree, rtokens, p):
    emb, in_dim = p["emb"], p["emb"].shape[1]

    def make_inputs(tokens, idxs):
        lut = emb[tokens]
        rows = [lut[i] if i < tokens.shape[0] else jnp.zeros((in_dim,), jnp.float32)
                for i in idxs]
        return jnp.stack(rows).reshape(len(idxs), 1, in_dim)

    lc, _ = _ref_tree(ltree[0], make_inputs(ltokens, ltree[1]), p)
    rc, _ = _ref_tree(rtree[0], make_inputs(rtokens, rtree[1]), p)
    vec = jnp.concatenate([lc * rc, jnp.abs(lc - rc)], axis=1)
    hid = jax.nn.sigmoid(vec @ p["wh_w"] + p["wh_b"])
    return jax.nn.log_softmax(hid @ p["wp_w"] + p["wp_b"], axis=1)


# ----------------------------------------------------------------------------
# Main
# ----------------------------------------------------------------------------
if __name__ == "__main__":
    vocab_size, in_dim, mem_dim = 20, 32, 32
    hidden_dim, num_classes = 16, 5
    seq = 8
    PAD = 0   # Constants.PAD

    key = jax.random.PRNGKey(0)
    ks = jax.random.split(key, 16)

    def rnd(k, shape, scale=0.1):
        return (scale * jax.random.normal(k, shape)).astype(jnp.float32)

    emb = rnd(ks[0], (vocab_size, in_dim), 1.0)
    emb = emb.at[PAD].set(0.0)                       # padding_idx row zeroed

    params = {
        "emb":    emb,
        # nn.Linear(in, out) -> weight (out, in); stored transposed as (in, out)
        "ioux_w": rnd(ks[1], (in_dim, 3 * mem_dim)),
        "ioux_b": rnd(ks[2], (1, 3 * mem_dim)),
        "iouh_w": rnd(ks[3], (mem_dim, 3 * mem_dim)),
        "iouh_b": rnd(ks[4], (1, 3 * mem_dim)),
        "fx_w":   rnd(ks[5], (in_dim, mem_dim)),
        "fx_b":   rnd(ks[6], (1, mem_dim)),
        "fh_w":   rnd(ks[7], (mem_dim, mem_dim)),
        "fh_b":   rnd(ks[8], (1, mem_dim)),
        # DASimilarity head: wh: Linear(2*mem, hidden), wp: Linear(hidden, classes)
        "wh_w":   rnd(ks[9], (2 * mem_dim, hidden_dim)),
        "wh_b":   rnd(ks[10], (1, hidden_dim)),
        "wp_w":   rnd(ks[11], (hidden_dim, num_classes)),
        "wp_b":   rnd(ks[12], (1, num_classes)),
    }

    # Deterministic small trees in post-order (children before parents, root last).
    # node_word_idx[i] = tree.idx of node i (index into the sentence).
    l_children = [[], [0], [], [1, 2], [], [], [4, 5], [3, 6]]   # balanced-ish, 8 nodes
    l_idx = list(range(8))
    r_children = [[], [0], [1], [2], [3], [4], [5]]              # right-branching chain, 7 nodes
    r_idx = list(range(7))

    ltokens = jax.random.randint(ks[13], (seq,), 1, vocab_size, dtype=jnp.int32)
    rtokens = jax.random.randint(ks[14], (seq,), 1, vocab_size, dtype=jnp.int32)

    out = similarity_tree_lstm_forward((l_children, l_idx), ltokens,
                                       (r_children, r_idx), rtokens, params)
    out = jax.block_until_ready(out)

    ref = _ref_forward((l_children, l_idx), ltokens,
                       (r_children, r_idx), rtokens, params)
    assert out.shape == (1, num_classes)
    assert jnp.allclose(out, ref, rtol=1e-3, atol=1e-3), (out, ref)

    print("KERNEL_OK")
</pallas_src>

<mosaic_0001>
module attributes {stable_mosaic.version = 11 : i64} {
  func.func @kernel(%arg0: memref<16x32xf32, #tpu.memory_space<vmem>>, %arg1: memref<32x128xf32, #tpu.memory_space<vmem>>, %arg2: memref<1x128xf32, #tpu.memory_space<vmem>>, %arg3: memref<32x128xf32, #tpu.memory_space<vmem>>, %arg4: memref<64x16xf32, #tpu.memory_space<vmem>>, %arg5: memref<1x16xf32, #tpu.memory_space<vmem>>, %arg6: memref<16x5xf32, #tpu.memory_space<vmem>>, %arg7: memref<1x5xf32, #tpu.memory_space<vmem>>, %arg8: memref<1x5xf32, #tpu.memory_space<vmem>>) attributes {dimension_semantics = [], scalar_prefetch = 0 : i64, scratch_operands = 0 : i64, tpu.core_type = #tpu.core_type<tc>} {
    %c0 = arith.constant 0 : index
    %c0_0 = arith.constant 0 : index
    %0 = vector.load %arg0[%c0, %c0_0] : memref<16x32xf32, #tpu.memory_space<vmem>>, vector<16x32xf32>
    %c0_1 = arith.constant 0 : index
    %c0_2 = arith.constant 0 : index
    %1 = vector.load %arg1[%c0_1, %c0_2] : memref<32x128xf32, #tpu.memory_space<vmem>>, vector<32x128xf32>
    %cst = arith.constant dense<0.000000e+00> : vector<16x128xf32>
    %2 = tpu.matmul %0, %1, %cst {dimension_numbers = #tpu.dot_dimension_numbers<[1], [0], [0], [1], [0, 0, 1, 1], [], []>} : vector<16x32xf32>, vector<32x128xf32>, vector<16x128xf32> -> vector<16x128xf32>
    %c0_3 = arith.constant 0 : index
    %c0_4 = arith.constant 0 : index
    %3 = vector.load %arg2[%c0_3, %c0_4] : memref<1x128xf32, #tpu.memory_space<vmem>>, vector<1x128xf32>
    %4 = vector.broadcast %3 : vector<1x128xf32> to vector<16x128xf32>
    %5 = arith.addf %2, %4 : vector<16x128xf32>
    %c0_5 = arith.constant 0 : index
    %c0_6 = arith.constant 0 : index
    %6 = vector.load %arg3[%c0_5, %c0_6] : memref<32x128xf32, #tpu.memory_space<vmem>>, vector<32x128xf32>
    %7 = vector.extract_strided_slice %5 {offsets = [0, 0], sizes = [2, 128], strides = [1, 1]} : vector<16x128xf32> to vector<2x128xf32>
    %8 = vector.extract_strided_slice %7 {offsets = [0, 0], sizes = [2, 96], strides = [1, 1]} : vector<2x128xf32> to vector<2x96xf32>
    %9 = vector.extract_strided_slice %8 {offsets = [0, 0], sizes = [2, 64], strides = [1, 1]} : vector<2x96xf32> to vector<2x64xf32>
    %10 = arith.negf %9 : vector<2x64xf32>
    %11 = math.exp %10 : vector<2x64xf32>
    %cst_7 = arith.constant 1.000000e+00 : f32
    %12 = vector.broadcast %cst_7 : f32 to vector<2x64xf32>
    %13 = arith.addf %12, %11 : vector<2x64xf32>
    %14 = arith.divf %12, %13 : vector<2x64xf32>
    %15 = vector.extract_strided_slice %14 {offsets = [0, 0], sizes = [2, 32], strides = [1, 1]} : vector<2x64xf32> to vector<2x32xf32>
    %16 = vector.extract_strided_slice %14 {offsets = [0, 32], sizes = [2, 32], strides = [1, 1]} : vector<2x64xf32> to vector<2x32xf32>
    %17 = vector.extract_strided_slice %8 {offsets = [0, 64], sizes = [2, 32], strides = [1, 1]} : vector<2x96xf32> to vector<2x32xf32>
    %18 = math.tanh %17 : vector<2x32xf32>
    %19 = arith.mulf %15, %18 : vector<2x32xf32>
    %20 = math.tanh %19 : vector<2x32xf32>
    %21 = arith.mulf %16, %20 : vector<2x32xf32>
    %22 = vector.extract_strided_slice %5 {offsets = [2, 0], sizes = [2, 128], strides = [1, 1]} : vector<16x128xf32> to vector<2x128xf32>
    %23 = vector.extract_strided_slice %21 {offsets = [0, 0], sizes = [1, 32], strides = [1, 1]} : vector<2x32xf32> to vector<1x32xf32>
    %24 = vector.extract_strided_slice %21 {offsets = [1, 0], sizes = [1, 32], strides = [1, 1]} : vector<2x32xf32> to vector<1x32xf32>
    %25 = vector.extract_strided_slice %19 {offsets = [0, 0], sizes = [1, 32], strides = [1, 1]} : vector<2x32xf32> to vector<1x32xf32>
    %26 = vector.extract_strided_slice %19 {offsets = [1, 0], sizes = [1, 32], strides = [1, 1]} : vector<2x32xf32> to vector<1x32xf32>
    %27 = tpu.concatenate %23, %24 in 0 : vector<1x32xf32>, vector<1x32xf32> -> vector<2x32xf32>
    %28 = tpu.concatenate %25, %26 in 0 : vector<1x32xf32>, vector<1x32xf32> -> vector<2x32xf32>
    %cst_8 = arith.constant dense<0.000000e+00> : vector<2x128xf32>
    %29 = tpu.matmul %27, %6, %cst_8 {dimension_numbers = #tpu.dot_dimension_numbers<[1], [0], [0], [1], [0, 0, 1, 1], [], []>} : vector<2x32xf32>, vector<32x128xf32>, vector<2x128xf32> -> vector<2x128xf32>
    %30 = vector.extract_strided_slice %22 {offsets = [0, 0], sizes = [2, 96], strides = [1, 1]} : vector<2x128xf32> to vector<2x96xf32>
    %31 = vector.extract_strided_slice %29 {offsets = [0, 0], sizes = [2, 96], strides = [1, 1]} : vector<2x128xf32> to vector<2x96xf32>
    %32 = vector.extract_strided_slice %31 {offsets = [0, 0], sizes = [1, 96], strides = [1, 1]} : vector<2x96xf32> to vector<1x96xf32>
    %cst_9 = arith.constant dense<0.000000e+00> : vector<96xf32>
    %33 = vector.multi_reduction <add>, %32, %cst_9 [0] : vector<1x96xf32> to vector<96xf32>
    %34 = vector.shape_cast %33 : vector<96xf32> to vector<1x96xf32>
    %35 = vector.extract_strided_slice %29 {offsets = [0, 0], sizes = [2, 96], strides = [1, 1]} : vector<2x128xf32> to vector<2x96xf32>
    %36 = vector.extract_strided_slice %35 {offsets = [1, 0], sizes = [1, 96], strides = [1, 1]} : vector<2x96xf32> to vector<1x96xf32>
    %cst_10 = arith.constant dense<0.000000e+00> : vector<96xf32>
    %37 = vector.multi_reduction <add>, %36, %cst_10 [0] : vector<1x96xf32> to vector<96xf32>
    %38 = vector.shape_cast %37 : vector<96xf32> to vector<1x96xf32>
    %39 = tpu.concatenate %34, %38 in 0 : vector<1x96xf32>, vector<1x96xf32> -> vector<2x96xf32>
    %40 = arith.addf %30, %39 : vector<2x96xf32>
    %41 = vector.extract_strided_slice %29 {offsets = [0, 96], sizes = [1, 32], strides = [1, 1]} : vector<2x128xf32> to vector<1x32xf32>
    %42 = vector.extract_strided_slice %22 {offsets = [0, 96], sizes = [1, 32], strides = [1, 1]} : vector<2x128xf32> to vector<1x32xf32>
    %43 = arith.addf %41, %42 : vector<1x32xf32>
    %44 = vector.extract_strided_slice %29 {offsets = [1, 96], sizes = [1, 32], strides = [1, 1]} : vector<2x128xf32> to vector<1x32xf32>
    %45 = vector.extract_strided_slice %22 {offsets = [1, 96], sizes = [1, 32], strides = [1, 1]} : vector<2x128xf32> to vector<1x32xf32>
    %46 = arith.addf %44, %45 : vector<1x32xf32>
    %47 = tpu.concatenate %43, %46 in 0 : vector<1x32xf32>, vector<1x32xf32> -> vector<2x32xf32>
    %48 = arith.negf %47 : vector<2x32xf32>
    %49 = math.exp %48 : vector<2x32xf32>
    %cst_11 = arith.constant 1.000000e+00 : f32
    %50 = vector.broadcast %cst_11 : f32 to vector<2x32xf32>
    %51 = arith.addf %50, %49 : vector<2x32xf32>
    %52 = arith.divf %50, %51 : vector<2x32xf32>
    %53 = arith.mulf %52, %28 : vector<2x32xf32>
    %54 = vector.extract_strided_slice %53 {offsets = [0, 0], sizes = [1, 32], strides = [1, 1]} : vector<2x32xf32> to vector<1x32xf32>
    %cst_12 = arith.constant dense<0.000000e+00> : vector<32xf32>
    %55 = vector.multi_reduction <add>, %54, %cst_12 [0] : vector<1x32xf32> to vector<32xf32>
    %56 = vector.shape_cast %55 : vector<32xf32> to vector<1x32xf32>
    %57 = vector.extract_strided_slice %53 {offsets = [1, 0], sizes = [1, 32], strides = [1, 1]} : vector<2x32xf32> to vector<1x32xf32>
    %cst_13 = arith.constant dense<0.000000e+00> : vector<32xf32>
    %58 = vector.multi_reduction <add>, %57, %cst_13 [0] : vector<1x32xf32> to vector<32xf32>
    %59 = vector.shape_cast %58 : vector<32xf32> to vector<1x32xf32>
    %60 = tpu.concatenate %56, %59 in 0 : vector<1x32xf32>, vector<1x32xf32> -> vector<2x32xf32>
    %61 = vector.extract_strided_slice %40 {offsets = [0, 0], sizes = [2, 64], strides = [1, 1]} : vector<2x96xf32> to vector<2x64xf32>
    %62 = arith.negf %61 : vector<2x64xf32>
    %63 = math.exp %62 : vector<2x64xf32>
    %cst_14 = arith.constant 1.000000e+00 : f32
    %64 = vector.broadcast %cst_14 : f32 to vector<2x64xf32>
    %65 = arith.addf %64, %63 : vector<2x64xf32>
    %66 = arith.divf %64, %65 : vector<2x64xf32>
    %67 = vector.extract_strided_slice %66 {offsets = [0, 0], sizes = [2, 32], strides = [1, 1]} : vector<2x64xf32> to vector<2x32xf32>
    %68 = vector.extract_strided_slice %66 {offsets = [0, 32], sizes = [2, 32], strides = [1, 1]} : vector<2x64xf32> to vector<2x32xf32>
    %69 = vector.extract_strided_slice %40 {offsets = [0, 64], sizes = [2, 32], strides = [1, 1]} : vector<2x96xf32> to vector<2x32xf32>
    %70 = math.tanh %69 : vector<2x32xf32>
    %71 = arith.mulf %67, %70 : vector<2x32xf32>
    %72 = arith.addf %71, %60 : vector<2x32xf32>
    %73 = math.tanh %72 : vector<2x32xf32>
    %74 = arith.mulf %68, %73 : vector<2x32xf32>
    %75 = vector.extract_strided_slice %5 {offsets = [4, 0], sizes = [2, 128], strides = [1, 1]} : vector<16x128xf32> to vector<2x128xf32>
    %76 = vector.extract_strided_slice %74 {offsets = [1, 0], sizes = [1, 32], strides = [1, 1]} : vector<2x32xf32> to vector<1x32xf32>
    %77 = vector.extract_strided_slice %72 {offsets = [1, 0], sizes = [1, 32], strides = [1, 1]} : vector<2x32xf32> to vector<1x32xf32>
    %cst_15 = arith.constant dense<0.000000e+00> : vector<1x128xf32>
    %78 = tpu.matmul %76, %6, %cst_15 {dimension_numbers = #tpu.dot_dimension_numbers<[1], [0], [0], [1], [0, 0, 1, 1], [], []>} : vector<1x32xf32>, vector<32x128xf32>, vector<1x128xf32> -> vector<1x128xf32>
    %79 = vector.extract_strided_slice %75 {offsets = [0, 0], sizes = [2, 96], strides = [1, 1]} : vector<2x128xf32> to vector<2x96xf32>
    %cst_16 = arith.constant 0.000000e+00 : f32
    %80 = vector.broadcast %cst_16 : f32 to vector<1x96xf32>
    %81 = vector.extract_strided_slice %78 {offsets = [0, 0], sizes = [1, 96], strides = [1, 1]} : vector<1x128xf32> to vector<1x96xf32>
    %cst_17 = arith.constant dense<0.000000e+00> : vector<96xf32>
    %82 = vector.multi_reduction <add>, %81, %cst_17 [0] : vector<1x96xf32> to vector<96xf32>
    %83 = vector.shape_cast %82 : vector<96xf32> to vector<1x96xf32>
    %84 = tpu.concatenate %80, %83 in 0 : vector<1x96xf32>, vector<1x96xf32> -> vector<2x96xf32>
    %85 = arith.addf %79, %84 : vector<2x96xf32>
    %86 = vector.extract_strided_slice %78 {offsets = [0, 96], sizes = [1, 32], strides = [1, 1]} : vector<1x128xf32> to vector<1x32xf32>
    %87 = vector.extract_strided_slice %75 {offsets = [1, 96], sizes = [1, 32], strides = [1, 1]} : vector<2x128xf32> to vector<1x32xf32>
    %88 = arith.addf %86, %87 : vector<1x32xf32>
    %89 = arith.negf %88 : vector<1x32xf32>
    %90 = math.exp %89 : vector<1x32xf32>
    %cst_18 = arith.constant 1.000000e+00 : f32
    %91 = vector.broadcast %cst_18 : f32 to vector<1x32xf32>
    %92 = arith.addf %91, %90 : vector<1x32xf32>
    %93 = arith.divf %91, %92 : vector<1x32xf32>
    %94 = arith.mulf %93, %77 : vector<1x32xf32>
    %cst_19 = arith.constant 0.000000e+00 : f32
    %95 = vector.broadcast %cst_19 : f32 to vector<1x32xf32>
    %cst_20 = arith.constant dense<0.000000e+00> : vector<32xf32>
    %96 = vector.multi_reduction <add>, %94, %cst_20 [0] : vector<1x32xf32> to vector<32xf32>
    %97 = vector.shape_cast %96 : vector<32xf32> to vector<1x32xf32>
    %98 = tpu.concatenate %95, %97 in 0 : vector<1x32xf32>, vector<1x32xf32> -> vector<2x32xf32>
    %99 = vector.extract_strided_slice %85 {offsets = [0, 0], sizes = [2, 64], strides = [1, 1]} : vector<2x96xf32> to vector<2x64xf32>
    %100 = arith.negf %99 : vector<2x64xf32>
    %101 = math.exp %100 : vector<2x64xf32>
    %cst_21 = arith.constant 1.000000e+00 : f32
    %102 = vector.broadcast %cst_21 : f32 to vector<2x64xf32>
    %103 = arith.addf %102, %101 : vector<2x64xf32>
    %104 = arith.divf %102, %103 : vector<2x64xf32>
    %105 = vector.extract_strided_slice %104 {offsets = [0, 0], sizes = [2, 32], strides = [1, 1]} : vector<2x64xf32> to vector<2x32xf32>
    %106 = vector.extract_strided_slice %104 {offsets = [0, 32], sizes = [2, 32], strides = [1, 1]} : vector<2x64xf32> to vector<2x32xf32>
    %107 = vector.extract_strided_slice %85 {offsets = [0, 64], sizes = [2, 32], strides = [1, 1]} : vector<2x96xf32> to vector<2x32xf32>
    %108 = math.tanh %107 : vector<2x32xf32>
    %109 = arith.mulf %105, %108 : vector<2x32xf32>
    %110 = arith.addf %109, %98 : vector<2x32xf32>
    %111 = math.tanh %110 : vector<2x32xf32>
    %112 = arith.mulf %106, %111 : vector<2x32xf32>
    %113 = vector.extract_strided_slice %5 {offsets = [6, 0], sizes = [2, 128], strides = [1, 1]} : vector<16x128xf32> to vector<2x128xf32>
    %114 = vector.extract_strided_slice %74 {offsets = [0, 0], sizes = [1, 32], strides = [1, 1]} : vector<2x32xf32> to vector<1x32xf32>
    %115 = vector.extract_strided_slice %112 {offsets = [0, 0], sizes = [1, 32], strides = [1, 1]} : vector<2x32xf32> to vector<1x32xf32>
    %116 = vector.extract_strided_slice %112 {offsets = [1, 0], sizes = [1, 32], strides = [1, 1]} : vector<2x32xf32> to vector<1x32xf32>
    %117 = vector.extract_strided_slice %72 {offsets = [0, 0], sizes = [1, 32], strides = [1, 1]} : vector<2x32xf32> to vector<1x32xf32>
    %118 = vector.extract_strided_slice %110 {offsets = [0, 0], sizes = [1, 32], strides = [1, 1]} : vector<2x32xf32> to vector<1x32xf32>
    %119 = vector.extract_strided_slice %110 {offsets = [1, 0], sizes = [1, 32], strides = [1, 1]} : vector<2x32xf32> to vector<1x32xf32>
    %120 = tpu.concatenate %114, %115, %116 in 0 : vector<1x32xf32>, vector<1x32xf32>, vector<1x32xf32> -> vector<3x32xf32>
    %121 = tpu.concatenate %117, %118, %119 in 0 : vector<1x32xf32>, vector<1x32xf32>, vector<1x32xf32> -> vector<3x32xf32>
    %cst_22 = arith.constant dense<0.000000e+00> : vector<3x128xf32>
    %122 = tpu.matmul %120, %6, %cst_22 {dimension_numbers = #tpu.dot_dimension_numbers<[1], [0], [0], [1], [0, 0, 1, 1], [], []>} : vector<3x32xf32>, vector<32x128xf32>, vector<3x128xf32> -> vector<3x128xf32>
    %123 = vector.extract_strided_slice %113 {offsets = [0, 0], sizes = [2, 96], strides = [1, 1]} : vector<2x128xf32> to vector<2x96xf32>
    %124 = vector.extract_strided_slice %122 {offsets = [0, 0], sizes = [3, 96], strides = [1, 1]} : vector<3x128xf32> to vector<3x96xf32>
    %125 = vector.extract_strided_slice %124 {offsets = [0, 0], sizes = [2, 96], strides = [1, 1]} : vector<3x96xf32> to vector<2x96xf32>
    %cst_23 = arith.constant dense<0.000000e+00> : vector<96xf32>
    %126 = vector.multi_reduction <add>, %125, %cst_23 [0] : vector<2x96xf32> to vector<96xf32>
    %127 = vector.shape_cast %126 : vector<96xf32> to vector<1x96xf32>
    %128 = vector.extract_strided_slice %122 {offsets = [0, 0], sizes = [3, 96], strides = [1, 1]} : vector<3x128xf32> to vector<3x96xf32>
    %129 = vector.extract_strided_slice %128 {offsets = [2, 0], sizes = [1, 96], strides = [1, 1]} : vector<3x96xf32> to vector<1x96xf32>
    %cst_24 = arith.constant dense<0.000000e+00> : vector<96xf32>
    %130 = vector.multi_reduction <add>, %129, %cst_24 [0] : vector<1x96xf32> to vector<96xf32>
    %131 = vector.shape_cast %130 : vector<96xf32> to vector<1x96xf32>
    %132 = tpu.concatenate %127, %131 in 0 : vector<1x96xf32>, vector<1x96xf32> -> vector<2x96xf32>
    %133 = arith.addf %123, %132 : vector<2x96xf32>
    %134 = vector.extract_strided_slice %122 {offsets = [0, 96], sizes = [2, 32], strides = [1, 1]} : vector<3x128xf32> to vector<2x32xf32>
    %135 = vector.extract_strided_slice %113 {offsets = [0, 96], sizes = [1, 32], strides = [1, 1]} : vector<2x128xf32> to vector<1x32xf32>
    %136 = vector.broadcast %135 : vector<1x32xf32> to vector<2x32xf32>
    %137 = arith.addf %134, %136 : vector<2x32xf32>
    %138 = vector.extract_strided_slice %122 {offsets = [2, 96], sizes = [1, 32], strides = [1, 1]} : vector<3x128xf32> to vector<1x32xf32>
    %139 = vector.extract_strided_slice %113 {offsets = [1, 96], sizes = [1, 32], strides = [1, 1]} : vector<2x128xf32> to vector<1x32xf32>
    %140 = arith.addf %138, %139 : vector<1x32xf32>
    %141 = tpu.concatenate %137, %140 in 0 : vector<2x32xf32>, vector<1x32xf32> -> vector<3x32xf32>
    %142 = arith.negf %141 : vector<3x32xf32>
    %143 = math.exp %142 : vector<3x32xf32>
    %cst_25 = arith.constant 1.000000e+00 : f32
    %144 = vector.broadcast %cst_25 : f32 to vector<3x32xf32>
    %145 = arith.addf %144, %143 : vector<3x32xf32>
    %146 = arith.divf %144, %145 : vector<3x32xf32>
    %147 = arith.mulf %146, %121 : vector<3x32xf32>
    %148 = vector.extract_strided_slice %147 {offsets = [0, 0], sizes = [2, 32], strides = [1, 1]} : vector<3x32xf32> to vector<2x32xf32>
    %cst_26 = arith.constant dense<0.000000e+00> : vector<32xf32>
    %149 = vector.multi_reduction <add>, %148, %cst_26 [0] : vector<2x32xf32> to vector<32xf32>
    %150 = vector.shape_cast %149 : vector<32xf32> to vector<1x32xf32>
    %151 = vector.extract_strided_slice %147 {offsets = [2, 0], sizes = [1, 32], strides = [1, 1]} : vector<3x32xf32> to vector<1x32xf32>
    %cst_27 = arith.constant dense<0.000000e+00> : vector<32xf32>
    %152 = vector.multi_reduction <add>, %151, %cst_27 [0] : vector<1x32xf32> to vector<32xf32>
    %153 = vector.shape_cast %152 : vector<32xf32> to vector<1x32xf32>
    %154 = tpu.concatenate %150, %153 in 0 : vector<1x32xf32>, vector<1x32xf32> -> vector<2x32xf32>
    %155 = vector.extract_strided_slice %133 {offsets = [0, 0], sizes = [2, 64], strides = [1, 1]} : vector<2x96xf32> to vector<2x64xf32>
    %156 = arith.negf %155 : vector<2x64xf32>
    %157 = math.exp %156 : vector<2x64xf32>
    %cst_28 = arith.constant 1.000000e+00 : f32
    %158 = vector.broadcast %cst_28 : f32 to vector<2x64xf32>
    %159 = arith.addf %158, %157 : vector<2x64xf32>
    %160 = arith.divf %158, %159 : vector<2x64xf32>
    %161 = vector.extract_strided_slice %160 {offsets = [0, 0], sizes = [2, 32], strides = [1, 1]} : vector<2x64xf32> to vector<2x32xf32>
    %162 = vector.extract_strided_slice %160 {offsets = [0, 32], sizes = [2, 32], strides = [1, 1]} : vector<2x64xf32> to vector<2x32xf32>
    %163 = vector.extract_strided_slice %133 {offsets = [0, 64], sizes = [2, 32], strides = [1, 1]} : vector<2x96xf32> to vector<2x32xf32>
    %164 = math.tanh %163 : vector<2x32xf32>
    %165 = arith.mulf %161, %164 : vector<2x32xf32>
    %166 = arith.addf %165, %154 : vector<2x32xf32>
    %167 = math.tanh %166 : vector<2x32xf32>
    %168 = arith.mulf %162, %167 : vector<2x32xf32>
    %169 = vector.extract_strided_slice %5 {offsets = [8, 0], sizes = [2, 128], strides = [1, 1]} : vector<16x128xf32> to vector<2x128xf32>
    %170 = vector.extract_strided_slice %168 {offsets = [1, 0], sizes = [1, 32], strides = [1, 1]} : vector<2x32xf32> to vector<1x32xf32>
    %171 = vector.extract_strided_slice %166 {offsets = [1, 0], sizes = [1, 32], strides = [1, 1]} : vector<2x32xf32> to vector<1x32xf32>
    %cst_29 = arith.constant dense<0.000000e+00> : vector<1x128xf32>
    %172 = tpu.matmul %170, %6, %cst_29 {dimension_numbers = #tpu.dot_dimension_numbers<[1], [0], [0], [1], [0, 0, 1, 1], [], []>} : vector<1x32xf32>, vector<32x128xf32>, vector<1x128xf32> -> vector<1x128xf32>
    %173 = vector.extract_strided_slice %169 {offsets = [0, 0], sizes = [2, 96], strides = [1, 1]} : vector<2x128xf32> to vector<2x96xf32>
    %cst_30 = arith.constant 0.000000e+00 : f32
    %174 = vector.broadcast %cst_30 : f32 to vector<1x96xf32>
    %175 = vector.extract_strided_slice %172 {offsets = [0, 0], sizes = [1, 96], strides = [1, 1]} : vector<1x128xf32> to vector<1x96xf32>
    %cst_31 = arith.constant dense<0.000000e+00> : vector<96xf32>
    %176 = vector.multi_reduction <add>, %175, %cst_31 [0] : vector<1x96xf32> to vector<96xf32>
    %177 = vector.shape_cast %176 : vector<96xf32> to vector<1x96xf32>
    %178 = tpu.concatenate %174, %177 in 0 : vector<1x96xf32>, vector<1x96xf32> -> vector<2x96xf32>
    %179 = arith.addf %173, %178 : vector<2x96xf32>
    %180 = vector.extract_strided_slice %172 {offsets = [0, 96], sizes = [1, 32], strides = [1, 1]} : vector<1x128xf32> to vector<1x32xf32>
    %181 = vector.extract_strided_slice %169 {offsets = [1, 96], sizes = [1, 32], strides = [1, 1]} : vector<2x128xf32> to vector<1x32xf32>
    %182 = arith.addf %180, %181 : vector<1x32xf32>
    %183 = arith.negf %182 : vector<1x32xf32>
    %184 = math.exp %183 : vector<1x32xf32>
    %cst_32 = arith.constant 1.000000e+00 : f32
    %185 = vector.broadcast %cst_32 : f32 to vector<1x32xf32>
    %186 = arith.addf %185, %184 : vector<1x32xf32>
    %187 = arith.divf %185, %186 : vector<1x32xf32>
    %188 = arith.mulf %187, %171 : vector<1x32xf32>
    %cst_33 = arith.constant 0.000000e+00 : f32
    %189 = vector.broadcast %cst_33 : f32 to vector<1x32xf32>
    %cst_34 = arith.constant dense<0.000000e+00> : vector<32xf32>
    %190 = vector.multi_reduction <add>, %188, %cst_34 [0] : vector<1x32xf32> to vector<32xf32>
    %191 = vector.shape_cast %190 : vector<32xf32> to vector<1x32xf32>
    %192 = tpu.concatenate %189, %191 in 0 : vector<1x32xf32>, vector<1x32xf32> -> vector<2x32xf32>
    %193 = vector.extract_strided_slice %179 {offsets = [0, 0], sizes = [2, 64], strides = [1, 1]} : vector<2x96xf32> to vector<2x64xf32>
    %194 = arith.negf %193 : vector<2x64xf32>
    %195 = math.exp %194 : vector<2x64xf32>
    %cst_35 = arith.constant 1.000000e+00 : f32
    %196 = vector.broadcast %cst_35 : f32 to vector<2x64xf32>
    %197 = arith.addf %196, %195 : vector<2x64xf32>
    %198 = arith.divf %196, %197 : vector<2x64xf32>
    %199 = vector.extract_strided_slice %198 {offsets = [0, 0], sizes = [2, 32], strides = [1, 1]} : vector<2x64xf32> to vector<2x32xf32>
    %200 = vector.extract_strided_slice %198 {offsets = [0, 32], sizes = [2, 32], strides = [1, 1]} : vector<2x64xf32> to vector<2x32xf32>
    %201 = vector.extract_strided_slice %179 {offsets = [0, 64], sizes = [2, 32], strides = [1, 1]} : vector<2x96xf32> to vector<2x32xf32>
    %202 = math.tanh %201 : vector<2x32xf32>
    %203 = arith.mulf %199, %202 : vector<2x32xf32>
    %204 = arith.addf %203, %192 : vector<2x32xf32>
    %205 = math.tanh %204 : vector<2x32xf32>
    %206 = arith.mulf %200, %205 : vector<2x32xf32>
    %207 = vector.extract_strided_slice %5 {offsets = [10, 0], sizes = [2, 128], strides = [1, 1]} : vector<16x128xf32> to vector<2x128xf32>
    %208 = vector.extract_strided_slice %206 {offsets = [1, 0], sizes = [1, 32], strides = [1, 1]} : vector<2x32xf32> to vector<1x32xf32>
    %209 = vector.extract_strided_slice %204 {offsets = [1, 0], sizes = [1, 32], strides = [1, 1]} : vector<2x32xf32> to vector<1x32xf32>
    %cst_36 = arith.constant dense<0.000000e+00> : vector<1x128xf32>
    %210 = tpu.matmul %208, %6, %cst_36 {dimension_numbers = #tpu.dot_dimension_numbers<[1], [0], [0], [1], [0, 0, 1, 1], [], []>} : vector<1x32xf32>, vector<32x128xf32>, vector<1x128xf32> -> vector<1x128xf32>
    %211 = vector.extract_strided_slice %207 {offsets = [0, 0], sizes = [2, 96], strides = [1, 1]} : vector<2x128xf32> to vector<2x96xf32>
    %cst_37 = arith.constant 0.000000e+00 : f32
    %212 = vector.broadcast %cst_37 : f32 to vector<1x96xf32>
    %213 = vector.extract_strided_slice %210 {offsets = [0, 0], sizes = [1, 96], strides = [1, 1]} : vector<1x128xf32> to vector<1x96xf32>
    %cst_38 = arith.constant dense<0.000000e+00> : vector<96xf32>
    %214 = vector.multi_reduction <add>, %213, %cst_38 [0] : vector<1x96xf32> to vector<96xf32>
    %215 = vector.shape_cast %214 : vector<96xf32> to vector<1x96xf32>
    %216 = tpu.concatenate %212, %215 in 0 : vector<1x96xf32>, vector<1x96xf32> -> vector<2x96xf32>
    %217 = arith.addf %211, %216 : vector<2x96xf32>
    %218 = vector.extract_strided_slice %210 {offsets = [0, 96], sizes = [1, 32], strides = [1, 1]} : vector<1x128xf32> to vector<1x32xf32>
    %219 = vector.extract_strided_slice %207 {offsets = [1, 96], sizes = [1, 32], strides = [1, 1]} : vector<2x128xf32> to vector<1x32xf32>
    %220 = arith.addf %218, %219 : vector<1x32xf32>
    %221 = arith.negf %220 : vector<1x32xf32>
    %222 = math.exp %221 : vector<1x32xf32>
    %cst_39 = arith.constant 1.000000e+00 : f32
    %223 = vector.broadcast %cst_39 : f32 to vector<1x32xf32>
    %224 = arith.addf %223, %222 : vector<1x32xf32>
    %225 = arith.divf %223, %224 : vector<1x32xf32>
    %226 = arith.mulf %225, %209 : vector<1x32xf32>
    %cst_40 = arith.constant 0.000000e+00 : f32
    %227 = vector.broadcast %cst_40 : f32 to vector<1x32xf32>
    %cst_41 = arith.constant dense<0.000000e+00> : vector<32xf32>
    %228 = vector.multi_reduction <add>, %226, %cst_41 [0] : vector<1x32xf32> to vector<32xf32>
    %229 = vector.shape_cast %228 : vector<32xf32> to vector<1x32xf32>
    %230 = tpu.concatenate %227, %229 in 0 : vector<1x32xf32>, vector<1x32xf32> -> vector<2x32xf32>
    %231 = vector.extract_strided_slice %217 {offsets = [0, 0], sizes = [2, 64], strides = [1, 1]} : vector<2x96xf32> to vector<2x64xf32>
    %232 = arith.negf %231 : vector<2x64xf32>
    %233 = math.exp %232 : vector<2x64xf32>
    %cst_42 = arith.constant 1.000000e+00 : f32
    %234 = vector.broadcast %cst_42 : f32 to vector<2x64xf32>
    %235 = arith.addf %234, %233 : vector<2x64xf32>
    %236 = arith.divf %234, %235 : vector<2x64xf32>
    %237 = vector.extract_strided_slice %236 {offsets = [0, 0], sizes = [2, 32], strides = [1, 1]} : vector<2x64xf32> to vector<2x32xf32>
    %238 = vector.extract_strided_slice %236 {offsets = [0, 32], sizes = [2, 32], strides = [1, 1]} : vector<2x64xf32> to vector<2x32xf32>
    %239 = vector.extract_strided_slice %217 {offsets = [0, 64], sizes = [2, 32], strides = [1, 1]} : vector<2x96xf32> to vector<2x32xf32>
    %240 = math.tanh %239 : vector<2x32xf32>
    %241 = arith.mulf %237, %240 : vector<2x32xf32>
    %242 = arith.addf %241, %230 : vector<2x32xf32>
    %243 = math.tanh %242 : vector<2x32xf32>
    %244 = arith.mulf %238, %243 : vector<2x32xf32>
    %245 = vector.extract_strided_slice %5 {offsets = [12, 0], sizes = [2, 128], strides = [1, 1]} : vector<16x128xf32> to vector<2x128xf32>
    %246 = vector.extract_strided_slice %206 {offsets = [0, 0], sizes = [1, 32], strides = [1, 1]} : vector<2x32xf32> to vector<1x32xf32>
    %247 = vector.extract_strided_slice %244 {offsets = [0, 0], sizes = [1, 32], strides = [1, 1]} : vector<2x32xf32> to vector<1x32xf32>
    %248 = vector.extract_strided_slice %244 {offsets = [1, 0], sizes = [1, 32], strides = [1, 1]} : vector<2x32xf32> to vector<1x32xf32>
    %249 = vector.extract_strided_slice %204 {offsets = [0, 0], sizes = [1, 32], strides = [1, 1]} : vector<2x32xf32> to vector<1x32xf32>
    %250 = vector.extract_strided_slice %242 {offsets = [0, 0], sizes = [1, 32], strides = [1, 1]} : vector<2x32xf32> to vector<1x32xf32>
    %251 = vector.extract_strided_slice %242 {offsets = [1, 0], sizes = [1, 32], strides = [1, 1]} : vector<2x32xf32> to vector<1x32xf32>
    %252 = tpu.concatenate %246, %247, %248 in 0 : vector<1x32xf32>, vector<1x32xf32>, vector<1x32xf32> -> vector<3x32xf32>
    %253 = tpu.concatenate %249, %250, %251 in 0 : vector<1x32xf32>, vector<1x32xf32>, vector<1x32xf32> -> vector<3x32xf32>
    %cst_43 = arith.constant dense<0.000000e+00> : vector<3x128xf32>
    %254 = tpu.matmul %252, %6, %cst_43 {dimension_numbers = #tpu.dot_dimension_numbers<[1], [0], [0], [1], [0, 0, 1, 1], [], []>} : vector<3x32xf32>, vector<32x128xf32>, vector<3x128xf32> -> vector<3x128xf32>
    %255 = vector.extract_strided_slice %245 {offsets = [0, 0], sizes = [2, 96], strides = [1, 1]} : vector<2x128xf32> to vector<2x96xf32>
    %256 = vector.extract_strided_slice %254 {offsets = [0, 0], sizes = [3, 96], strides = [1, 1]} : vector<3x128xf32> to vector<3x96xf32>
    %257 = vector.extract_strided_slice %256 {offsets = [0, 0], sizes = [2, 96], strides = [1, 1]} : vector<3x96xf32> to vector<2x96xf32>
    %cst_44 = arith.constant dense<0.000000e+00> : vector<96xf32>
    %258 = vector.multi_reduction <add>, %257, %cst_44 [0] : vector<2x96xf32> to vector<96xf32>
    %259 = vector.shape_cast %258 : vector<96xf32> to vector<1x96xf32>
    %260 = vector.extract_strided_slice %254 {offsets = [0, 0], sizes = [3, 96], strides = [1, 1]} : vector<3x128xf32> to vector<3x96xf32>
    %261 = vector.extract_strided_slice %260 {offsets = [2, 0], sizes = [1, 96], strides = [1, 1]} : vector<3x96xf32> to vector<1x96xf32>
    %cst_45 = arith.constant dense<0.000000e+00> : vector<96xf32>
    %262 = vector.multi_reduction <add>, %261, %cst_45 [0] : vector<1x96xf32> to vector<96xf32>
    %263 = vector.shape_cast %262 : vector<96xf32> to vector<1x96xf32>
    %264 = tpu.concatenate %259, %263 in 0 : vector<1x96xf32>, vector<1x96xf32> -> vector<2x96xf32>
    %265 = arith.addf %255, %264 : vector<2x96xf32>
    %266 = vector.extract_strided_slice %254 {offsets = [0, 96], sizes = [2, 32], strides = [1, 1]} : vector<3x128xf32> to vector<2x32xf32>
    %267 = vector.extract_strided_slice %245 {offsets = [0, 96], sizes = [1, 32], strides = [1, 1]} : vector<2x128xf32> to vector<1x32xf32>
    %268 = vector.broadcast %267 : vector<1x32xf32> to vector<2x32xf32>
    %269 = arith.addf %266, %268 : vector<2x32xf32>
    %270 = vector.extract_strided_slice %254 {offsets = [2, 96], sizes = [1, 32], strides = [1, 1]} : vector<3x128xf32> to vector<1x32xf32>
    %271 = vector.extract_strided_slice %245 {offsets = [1, 96], sizes = [1, 32], strides = [1, 1]} : vector<2x128xf32> to vector<1x32xf32>
    %272 = arith.addf %270, %271 : vector<1x32xf32>
    %273 = tpu.concatenate %269, %272 in 0 : vector<2x32xf32>, vector<1x32xf32> -> vector<3x32xf32>
    %274 = arith.negf %273 : vector<3x32xf32>
    %275 = math.exp %274 : vector<3x32xf32>
    %cst_46 = arith.constant 1.000000e+00 : f32
    %276 = vector.broadcast %cst_46 : f32 to vector<3x32xf32>
    %277 = arith.addf %276, %275 : vector<3x32xf32>
    %278 = arith.divf %276, %277 : vector<3x32xf32>
    %279 = arith.mulf %278, %253 : vector<3x32xf32>
    %280 = vector.extract_strided_slice %279 {offsets = [0, 0], sizes = [2, 32], strides = [1, 1]} : vector<3x32xf32> to vector<2x32xf32>
    %cst_47 = arith.constant dense<0.000000e+00> : vector<32xf32>
    %281 = vector.multi_reduction <add>, %280, %cst_47 [0] : vector<2x32xf32> to vector<32xf32>
    %282 = vector.shape_cast %281 : vector<32xf32> to vector<1x32xf32>
    %283 = vector.extract_strided_slice %279 {offsets = [2, 0], sizes = [1, 32], strides = [1, 1]} : vector<3x32xf32> to vector<1x32xf32>
    %cst_48 = arith.constant dense<0.000000e+00> : vector<32xf32>
    %284 = vector.multi_reduction <add>, %283, %cst_48 [0] : vector<1x32xf32> to vector<32xf32>
    %285 = vector.shape_cast %284 : vector<32xf32> to vector<1x32xf32>
    %286 = tpu.concatenate %282, %285 in 0 : vector<1x32xf32>, vector<1x32xf32> -> vector<2x32xf32>
    %287 = vector.extract_strided_slice %265 {offsets = [0, 0], sizes = [2, 64], strides = [1, 1]} : vector<2x96xf32> to vector<2x64xf32>
    %288 = arith.negf %287 : vector<2x64xf32>
    %289 = math.exp %288 : vector<2x64xf32>
    %cst_49 = arith.constant 1.000000e+00 : f32
    %290 = vector.broadcast %cst_49 : f32 to vector<2x64xf32>
    %291 = arith.addf %290, %289 : vector<2x64xf32>
    %292 = arith.divf %290, %291 : vector<2x64xf32>
    %293 = vector.extract_strided_slice %292 {offsets = [0, 0], sizes = [2, 32], strides = [1, 1]} : vector<2x64xf32> to vector<2x32xf32>
    %294 = vector.extract_strided_slice %292 {offsets = [0, 32], sizes = [2, 32], strides = [1, 1]} : vector<2x64xf32> to vector<2x32xf32>
    %295 = vector.extract_strided_slice %265 {offsets = [0, 64], sizes = [2, 32], strides = [1, 1]} : vector<2x96xf32> to vector<2x32xf32>
    %296 = math.tanh %295 : vector<2x32xf32>
    %297 = arith.mulf %293, %296 : vector<2x32xf32>
    %298 = arith.addf %297, %286 : vector<2x32xf32>
    %299 = math.tanh %298 : vector<2x32xf32>
    %300 = arith.mulf %294, %299 : vector<2x32xf32>
    %301 = vector.extract_strided_slice %5 {offsets = [14, 0], sizes = [2, 128], strides = [1, 1]} : vector<16x128xf32> to vector<2x128xf32>
    %302 = vector.extract_strided_slice %168 {offsets = [0, 0], sizes = [1, 32], strides = [1, 1]} : vector<2x32xf32> to vector<1x32xf32>
    %303 = vector.extract_strided_slice %300 {offsets = [0, 0], sizes = [1, 32], strides = [1, 1]} : vector<2x32xf32> to vector<1x32xf32>
    %304 = vector.extract_strided_slice %166 {offsets = [0, 0], sizes = [1, 32], strides = [1, 1]} : vector<2x32xf32> to vector<1x32xf32>
    %305 = vector.extract_strided_slice %298 {offsets = [0, 0], sizes = [1, 32], strides = [1, 1]} : vector<2x32xf32> to vector<1x32xf32>
    %306 = tpu.concatenate %302, %303 in 0 : vector<1x32xf32>, vector<1x32xf32> -> vector<2x32xf32>
    %307 = tpu.concatenate %304, %305 in 0 : vector<1x32xf32>, vector<1x32xf32> -> vector<2x32xf32>
    %cst_50 = arith.constant dense<0.000000e+00> : vector<2x128xf32>
    %308 = tpu.matmul %306, %6, %cst_50 {dimension_numbers = #tpu.dot_dimension_numbers<[1], [0], [0], [1], [0, 0, 1, 1], [], []>} : vector<2x32xf32>, vector<32x128xf32>, vector<2x128xf32> -> vector<2x128xf32>
    %309 = vector.extract_strided_slice %301 {offsets = [0, 0], sizes = [2, 96], strides = [1, 1]} : vector<2x128xf32> to vector<2x96xf32>
    %310 = vector.extract_strided_slice %308 {offsets = [0, 0], sizes = [2, 96], strides = [1, 1]} : vector<2x128xf32> to vector<2x96xf32>
    %cst_51 = arith.constant dense<0.000000e+00> : vector<96xf32>
    %311 = vector.multi_reduction <add>, %310, %cst_51 [0] : vector<2x96xf32> to vector<96xf32>
    %312 = vector.shape_cast %311 : vector<96xf32> to vector<1x96xf32>
    %cst_52 = arith.constant 0.000000e+00 : f32
    %313 = vector.broadcast %cst_52 : f32 to vector<1x96xf32>
    %314 = tpu.concatenate %312, %313 in 0 : vector<1x96xf32>, vector<1x96xf32> -> vector<2x96xf32>
    %315 = arith.addf %309, %314 : vector<2x96xf32>
    %316 = vector.extract_strided_slice %308 {offsets = [0, 96], sizes = [2, 32], strides = [1, 1]} : vector<2x128xf32> to vector<2x32xf32>
    %317 = vector.extract_strided_slice %301 {offsets = [0, 96], sizes = [1, 32], strides = [1, 1]} : vector<2x128xf32> to vector<1x32xf32>
    %318 = vector.broadcast %317 : vector<1x32xf32> to vector<2x32xf32>
    %319 = arith.addf %316, %318 : vector<2x32xf32>
    %320 = arith.negf %319 : vector<2x32xf32>
    %321 = math.exp %320 : vector<2x32xf32>
    %cst_53 = arith.constant 1.000000e+00 : f32
    %322 = vector.broadcast %cst_53 : f32 to vector<2x32xf32>
    %323 = arith.addf %322, %321 : vector<2x32xf32>
    %324 = arith.divf %322, %323 : vector<2x32xf32>
    %325 = arith.mulf %324, %307 : vector<2x32xf32>
    %cst_54 = arith.constant dense<0.000000e+00> : vector<32xf32>
    %326 = vector.multi_reduction <add>, %325, %cst_54 [0] : vector<2x32xf32> to vector<32xf32>
    %327 = vector.shape_cast %326 : vector<32xf32> to vector<1x32xf32>
    %cst_55 = arith.constant 0.000000e+00 : f32
    %328 = vector.broadcast %cst_55 : f32 to vector<1x32xf32>
    %329 = tpu.concatenate %327, %328 in 0 : vector<1x32xf32>, vector<1x32xf32> -> vector<2x32xf32>
    %330 = vector.extract_strided_slice %315 {offsets = [0, 0], sizes = [2, 64], strides = [1, 1]} : vector<2x96xf32> to vector<2x64xf32>
    %331 = arith.negf %330 : vector<2x64xf32>
    %332 = math.exp %331 : vector<2x64xf32>
    %cst_56 = arith.constant 1.000000e+00 : f32
    %333 = vector.broadcast %cst_56 : f32 to vector<2x64xf32>
    %334 = arith.addf %333, %332 : vector<2x64xf32>
    %335 = arith.divf %333, %334 : vector<2x64xf32>
    %336 = vector.extract_strided_slice %335 {offsets = [0, 0], sizes = [2, 32], strides = [1, 1]} : vector<2x64xf32> to vector<2x32xf32>
    %337 = vector.extract_strided_slice %315 {offsets = [0, 64], sizes = [2, 32], strides = [1, 1]} : vector<2x96xf32> to vector<2x32xf32>
    %338 = math.tanh %337 : vector<2x32xf32>
    %339 = arith.mulf %336, %338 : vector<2x32xf32>
    %340 = arith.addf %339, %329 : vector<2x32xf32>
    %341 = vector.extract_strided_slice %340 {offsets = [0, 0], sizes = [1, 32], strides = [1, 1]} : vector<2x32xf32> to vector<1x32xf32>
    %342 = vector.extract_strided_slice %298 {offsets = [1, 0], sizes = [1, 32], strides = [1, 1]} : vector<2x32xf32> to vector<1x32xf32>
    %343 = arith.mulf %341, %342 : vector<1x32xf32>
    %344 = arith.subf %341, %342 : vector<1x32xf32>
    %345 = math.absf %344 : vector<1x32xf32>
    %346 = tpu.concatenate %343, %345 in 1 : vector<1x32xf32>, vector<1x32xf32> -> vector<1x64xf32>
    %c0_57 = arith.constant 0 : index
    %c0_58 = arith.constant 0 : index
    %347 = vector.load %arg4[%c0_57, %c0_58] : memref<64x16xf32, #tpu.memory_space<vmem>>, vector<64x16xf32>
    %cst_59 = arith.constant dense<0.000000e+00> : vector<1x16xf32>
    %348 = tpu.matmul %346, %347, %cst_59 {dimension_numbers = #tpu.dot_dimension_numbers<[1], [0], [0], [1], [0, 0, 1, 1], [], []>} : vector<1x64xf32>, vector<64x16xf32>, vector<1x16xf32> -> vector<1x16xf32>
    %c0_60 = arith.constant 0 : index
    %c0_61 = arith.constant 0 : index
    %349 = vector.load %arg5[%c0_60, %c0_61] : memref<1x16xf32, #tpu.memory_space<vmem>>, vector<1x16xf32>
    %350 = arith.addf %348, %349 : vector<1x16xf32>
    %351 = arith.negf %350 : vector<1x16xf32>
    %352 = math.exp %351 : vector<1x16xf32>
    %cst_62 = arith.constant 1.000000e+00 : f32
    %353 = vector.broadcast %cst_62 : f32 to vector<1x16xf32>
    %354 = arith.addf %353, %352 : vector<1x16xf32>
    %355 = arith.divf %353, %354 : vector<1x16xf32>
    %c0_63 = arith.constant 0 : index
    %c0_64 = arith.constant 0 : index
    %356 = vector.load %arg6[%c0_63, %c0_64] : memref<16x5xf32, #tpu.memory_space<vmem>>, vector<16x5xf32>
    %cst_65 = arith.constant dense<0.000000e+00> : vector<1x5xf32>
    %357 = tpu.matmul %355, %356, %cst_65 {dimension_numbers = #tpu.dot_dimension_numbers<[1], [0], [0], [1], [0, 0, 1, 1], [], []>} : vector<1x16xf32>, vector<16x5xf32>, vector<1x5xf32> -> vector<1x5xf32>
    %c0_66 = arith.constant 0 : index
    %c0_67 = arith.constant 0 : index
    %358 = vector.load %arg7[%c0_66, %c0_67] : memref<1x5xf32, #tpu.memory_space<vmem>>, vector<1x5xf32>
    %359 = arith.addf %357, %358 : vector<1x5xf32>
    %cst_68 = arith.constant dense<0xFF800000> : vector<1xf32>
    %360 = vector.multi_reduction <maximumf>, %359, %cst_68 [1] : vector<1x5xf32> to vector<1xf32>
    %361 = vector.shape_cast %360 : vector<1xf32> to vector<1x1xf32>
    %362 = vector.broadcast %361 : vector<1x1xf32> to vector<1x5xf32>
    %363 = arith.subf %359, %362 : vector<1x5xf32>
    %364 = math.exp %363 : vector<1x5xf32>
    %cst_69 = arith.constant dense<0.000000e+00> : vector<1xf32>
    %365 = vector.multi_reduction <add>, %364, %cst_69 [1] : vector<1x5xf32> to vector<1xf32>
    %366 = vector.shape_cast %365 : vector<1xf32> to vector<1x1xf32>
    %367 = math.log %366 : vector<1x1xf32>
    %368 = vector.broadcast %367 : vector<1x1xf32> to vector<1x5xf32>
    %369 = arith.subf %363, %368 : vector<1x5xf32>
    %c0_70 = arith.constant 0 : index
    %c0_71 = arith.constant 0 : index
    %370 = vector.load %arg8[%c0_70, %c0_71] : memref<1x5xf32, #tpu.memory_space<vmem>>, vector<1x5xf32>
    tpu.vector_store %arg8[%c0_70, %c0_71], %369 {strides = array<i32>} : memref<1x5xf32, #tpu.memory_space<vmem>>, vector<1x5xf32>,
    return
  }
}

</mosaic_0001>

<bundles_post_ra>
// kernel: tpu_custom_call.1
= control target key start
LH: loop header
LB: loop body
LE: loop exit
PB: predicated region body
PF: predicated region fallthrough
CT: control target
= control target key end

     0   :  { %vm43_vm0 = vcmask 261120   ;;  %s2016_s0 = inlined_call_operand.vmem [shape: f32[16,32], index: 0, kind: input, shape index: {}]   ;;  %s2017_s1 = inlined_call_operand.vmem [shape: f32[32,128], index: 1, kind: input, shape index: {}]   ;;  %s2018_s2 = inlined_call_operand.vmem [shape: f32[1,128], index: 2, kind: input, shape index: {}]   ;;  %s2019_s3 = inlined_call_operand.vmem [shape: f32[32,128], index: 3, kind: input, shape index: {}]   ;;  %s2020_s4 = inlined_call_operand.vmem [shape: f32[64,16], index: 4, kind: input, shape index: {}]   ;;  %s2021_s5 = inlined_call_operand.vmem [shape: f32[1,16], index: 5, kind: input, shape index: {}]   ;;  %s2022_s6 = inlined_call_operand.vmem [shape: f32[16,5], index: 6, kind: input, shape index: {}]   ;;  %s2023_s7 = inlined_call_operand.vmem [shape: f32[1,5], index: 7, kind: input, shape index: {}]   ;;  %s2024_s8 = inlined_call_operand.hbm [shape: f32[1,5], index: 8, kind: output, shape index: {}]  }
   0x1   :  { %v32_v0 = vld [vmem:[%s2017_s1] sm:$0xff]  ;;  %v33_v1 = vld [vmem:[%s2017_s1 + $0x8] sm:$0xff]  ;;  %v34_v2 = vld [vmem:[%s2017_s1 + $0x10] sm:$0xff] }
   0x2   :  { %v1508_v3 = vpack.c.bf16 %v33_v1, %v32_v0  ;;  %v35_v4 = vld [vmem:[%s2017_s1 + $0x18] sm:$0xff]  ;;  %v30_v5 = vld [vmem:[%s2016_s0] sm:$0xff] }
   0x3   :  { %v1512_v6 = vpack.c.bf16 %v35_v4, %v34_v2  ;;  %1402 = vmatprep.mubr.msk.f32.mxu1 %vm43_vm0, %v30_v5 }
   0x4   :  { %13 = vsyncpa [#allocation3], 0  ;;  %1509 = vmatprep.subr.bf16.mxu1 %v1508_v3  ;;  %v31_v7 = vld [vmem:[%s2016_s0 + $0x8] sm:$0xff]  ;;  %v1313_v8 = vld [vmem:[%s2018_s2] ss:$0 sm:$0xff]  ;;  %s1702_s18 = smov 64  }
   0x5   :  { %1511 = vmatpush3.bf16.msra.mxu1 %v1508_v3  ;;  %v125_v20 = vld [vmem:[%s2019_s3] sm:$0xff]  ;;  %v126_v21 = vld [vmem:[%s2019_s3 + $0x8] sm:$0xff]  ;;  %v127_v22 = vld [vmem:[%s2019_s3 + $0x10] sm:$0xff]  ;;  %v1703_v23 = vmov 0.0|0.0   ;;  %vm1704_vm1 = vmmov 0   ;;  %v1705_v26 = vmov 0.0  }
   0x6   :  { %1513 = vmatprep.subr.bf16.mxu1 %v1512_v6  ;;  %v1794_v24 = vpack.c.bf16 %v126_v21, %v125_v20  ;;  %v128_v25 = vld [vmem:[%s2019_s3 + $0x18] sm:$0xff]  ;;  %1522 = vmatprep.subr.bf16.mxu0 %v1703_v23  ;;  %s1706_s3 = smov 32   ;;  %s1707_s25 = smov 96   ;;  %vm223_vm2 = vcmask 1040384   ;;  %vm403_vm3 = vcmask 1041408   ;;  %vm487_vm4 = vcmask 779264  }
   0x7   :  { %1424 = vmatprep.mubr.msk.f32.mxu0 %vm1704_vm1, %v1705_v26  ;;  %v1805_v27 = vpack.c.bf16 %v128_v25, %v127_v22  ;;  %vm522_vm5 = vcmask 1042176   ;;  %vm1129_vm6 = vcmask 523264   ;;  %vm1211_vm7 = vcmask 130048  }
   0x8   :  { %1524 = vmatpush3.bf16.msra.mxu0 %v1794_v24  ;;  %vm1285_vm8 = vcmask 32768  }
   0x9   :  { %1515 = vmatpush3.bf16.msra.mxu1 %v1512_v6  ;;  %1525 = vmatprep.subr.bf16.mxu0 %v1703_v23 }
   0xa   :  { %1516 = vmatprep.subr.bf16.mxu1 %v1703_v23 }
   0xc   :  { %1403 = vmatmul.mubr.msk.f32.vlgmr.msra.gmra.mrb[0].mxu1 %vm43_vm0, %v31_v7  ;;  %1527 = vmatpush3.bf16.msra.mxu0 %v1805_v27 }
   0xd   :  { %1413 = vmatprep.mubr.msk.f32.mxu1 %vm1704_vm1, %v1705_v26  ;;  %1518 = vmatpush3.bf16.msra.mxu1 %v1794_v24 }
   0xe   :  { %1519 = vmatprep.subr.bf16.mxu1 %v1703_v23  ;;  %1534 = vmatprep.subr.bf16.mxu0 %v1703_v23 }
  0x11   :  { %1521 = vmatpush3.bf16.msra.mxu1 %v1805_v27 }
  0x12   :  { %1528 = vmatprep.subr.bf16.mxu1 %v1703_v23 }
  0xdf   :  { %v1404_v9 = vpop.f32.mrb[0].mxu1 }
  0xe0   :  { %v1777_v10 = vadd.f32 %v1404_v9, %v1313_v8  ;;  %v116_v11 = vpop.f32.mrb[1].mxu1 }
  0xe1   :  { %v1779_v12 = vadd.f32 %v1313_v8, %v116_v11 }
  0xe3   :  { %1580 = vtanh.f32 %v1779_v12  ;;  %v1316_v14 = vmul.f32 -1.442695, %v1779_v12  ;;  %v229_v32 = vrot.slane %v1779_v12, 2  ;;  %v353_v60 = vrot.slane %v1779_v12, 5 }
  0xe5   :  { %1582 = vpow2.f32 %v1316_v14 }
  0xed   :  { %v1581_v13 = vpop.eup %1580 }
  0xee   :  { %137 = vrot.lane.b32.xlu0 %v1581_v13, %s1702_s18 }
  0xef   :  { %v1583_v15 = vpop.eup %1582 }
  0xf0   :  { %v132_v16 = vadd.f32 1.0, %v1583_v15 }
  0xf2   :  { %1584 = vrcp.f32 %v132_v16 }
  0xfc   :  { %v1585_v17 = vpop.eup %1584 }
 0x160   :  { %v138_v18 = vpop.permute.xlu0 %137 }
 0x161   :  { %v140_v19 = vmul.f32 %v1585_v17, %v138_v18 }
 0x163   :  { %1586 = vtanh.f32 %v140_v19 }
 0x16d   :  { %v1587_v28 = vpop.eup %1586 }
 0x16e   :  { %143 = vrot.lane.b32.xlu0 %v1587_v28, %s1706_s3 }
 0x1e0   :  { %v144_v29 = vpop.permute.xlu0 %143 }
 0x1e1   :  { %v146_v30 = vmul.f32 %v1585_v17, %v144_v29 }
 0x1e3   :  { %148 = vrot.lane.b32.xlu1 %v146_v30, %s1707_s25 }
 0x1e7   :  { %239 = vrot.lane.b32.xlu1 %v140_v19, %s1707_s25 }
 0x255   :  { %v149_v31 = vpop.permute.xlu1 %148 }
 0x256   :  { %1414 = vmatmul.mubr.msk.f32.vlgmr.msra.gmra.mrb[2].mxu1 %vm43_vm0, %v149_v31 }
 0x257   :  { %1530 = vmatpush3.bf16.msra.mxu1 %v1794_v24  ;;  %1435 = vmatprep.mubr.msk.f32.mxu1 %vm1704_vm1, %v1705_v26 }
 0x258   :  { %1531 = vmatprep.subr.bf16.mxu1 %v1703_v23 }
 0x259   :  { %v240_v43 = vpop.permute.xlu1 %239 }
 0x25b   :  { %1533 = vmatpush3.bf16.msra.mxu1 %v1805_v27 }
 0x25c   :  { %1540 = vmatprep.subr.bf16.mxu1 %v1703_v23 }
 0x329   :  { %v218_v33 = vpop.f32.mrb[2].mxu1 }
 0x32a   :  { %v225_v34 = vrot.slane %v218_v33, 6  ;;  %v231_v35 = vadd.f32 %v229_v32, %v218_v33  ;;  %v1415_v36 = vpop.f32.mrb[3].mxu1 }
 0x32c   :  { %v227_v37 = vadd.f32 %v225_v34, %v1779_v12  ;;  %v1318_v38 = vmul.f32 -1.442695, %v231_v35 }
 0x32e   :  { %1588 = vpow2.f32 %v1318_v38  ;;  %v1319_v46 = vmul.f32 -1.442695, %v227_v37 }
 0x32f   :  { %1590 = vtanh.f32 %v227_v37 }
 0x338   :  { %v1589_v39 = vpop.eup %1588 }
 0x339   :  { %v1591_v40 = vpop.eup %1590  ;;  %v235_v41 = vadd.f32 1.0, %v1589_v39 }
 0x33a   :  { %252 = vrot.lane.b32.xlu0 %v1591_v40, %s1702_s18  ;;  %v504_v40 = vlaneseq }
 0x33b   :  { %1592 = vrcp.f32 %v235_v41 }
 0x33c   :  { %1594 = vpow2.f32 %v1319_v46  ;;  %v1860_v41 = vshrl.u32 %v504_v40, 7 }
 0x345   :  { %v1593_v42 = vpop.eup %1592 }
 0x346   :  { %v242_v44 = vmul.f32 %v1593_v42, %v240_v43  ;;  %v1595_v47 = vpop.eup %1594  ;;  %v506_v42 = vsub.s32 6, %v1860_v41 }
 0x347   :  { %v247_v48 = vadd.f32 1.0, %v1595_v47 }
 0x348   :  { %v257_v45 = vrot.slane %v242_v44, 6  ;;  %v507_v43 = vrot.slane %v1779_v12, %v506_v42 }
 0x349   :  { %1596 = vrcp.f32 %v247_v48 }
 0x34a   :  { %258 = vrot.lane.b32.xlu1 %v257_v45, %s1706_s3 }
 0x353   :  { %v1597_v50 = vpop.eup %1596 }
 0x3ac   :  { %v253_v49 = vpop.permute.xlu0 %252 }
 0x3ad   :  { %v255_v51 = vmul.f32 %v1597_v50, %v253_v49 }
 0x3bc   :  { %v259_v52 = vpop.permute.xlu1 %258 }
 0x3bd   :  { %v261_v53 = vadd.f32 %v259_v52, %v255_v51 }
 0x3bf   :  { %1598 = vtanh.f32 %v261_v53  ;;  %v363_v55 = vrot.slane %v261_v53, 3  ;;  %v405_v29 = vrot.slane %v261_v53, 2 }
 0x3c9   :  { %v1599_v54 = vpop.eup %1598 }
 0x3ca   :  { %264 = vrot.lane.b32.xlu0 %v1599_v54, %s1706_s3 }
 0x3ce   :  { %364 = vrot.lane.b32.xlu0 %v363_v55, %s1707_s25 }
 0x43c   :  { %v265_v56 = vpop.permute.xlu0 %264 }
 0x43d   :  { %v267_v57 = vmul.f32 %v1597_v50, %v265_v56 }
 0x43f   :  { %v269_v58 = vrot.slane %v267_v57, 3  ;;  %v397_v35 = vrot.slane %v267_v57, 2 }
 0x440   :  { %v365_v9 = vpop.permute.xlu0 %364 }
 0x441   :  { %270 = vrot.lane.b32.xlu1 %v269_v58, %s1707_s25 }
 0x4b3   :  { %v271_v59 = vpop.permute.xlu1 %270 }
 0x4b4   :  { %1425 = vmatmul.mubr.msk.f32.vlgmr.msra.gmra.mrb[0].mxu0 %vm43_vm0, %v271_v59 }
 0x4b5   :  { %1536 = vmatpush3.bf16.msra.mxu0 %v1794_v24  ;;  %1446 = vmatprep.mubr.msk.f32.mxu0 %vm1704_vm1, %v1705_v26 }
 0x4b6   :  { %1537 = vmatprep.subr.bf16.mxu0 %v1703_v23 }
 0x4b9   :  { %1539 = vmatpush3.bf16.msra.mxu0 %v1805_v27 }
 0x4ba   :  { %1546 = vmatprep.subr.bf16.mxu0 %v1703_v23 }
 0x587   :  { %v340_v61 = vpop.f32.mrb[0].mxu0 }
 0x588   :  { %v346_v62 = vrot.slane %v340_v61, 7  ;;  %v355_v63 = vadd.f32 %v353_v60, %v340_v61  ;;  %v1426_v0 = vpop.f32.mrb[1].mxu0 }
 0x58a   :  { %v348_v1 = vsel %vm223_vm2, 0.0, %v346_v62  ;;  %v1321_v2 = vmul.f32 -1.442695, %v355_v63 }
 0x58b   :  { %v350_v3 = vrot.slane %v348_v1, 4 }
 0x58c   :  { %1600 = vpow2.f32 %v1321_v2 }
 0x58d   :  { %v352_v4 = vadd.f32 %v350_v3, %v1779_v12 }
 0x58f   :  { %1602 = vtanh.f32 %v352_v4  ;;  %v1322_v14 = vmul.f32 -1.442695, %v352_v4 }
 0x596   :  { %v1601_v5 = vpop.eup %1600 }
 0x597   :  { %v359_v6 = vadd.f32 1.0, %v1601_v5 }
 0x599   :  { %v1603_v7 = vpop.eup %1602  ;;  %1604 = vrcp.f32 %v359_v6 }
 0x59a   :  { %383 = vrot.lane.b32.xlu0 %v1603_v7, %s1702_s18  ;;  %1606 = vpow2.f32 %v1322_v14 }
 0x5a3   :  { %v1605_v8 = vpop.eup %1604 }
 0x5a4   :  { %v367_v11 = vmul.f32 %v1605_v8, %v365_v9  ;;  %v1607_v15 = vpop.eup %1606 }
 0x5a5   :  { %v378_v16 = vadd.f32 1.0, %v1607_v15 }
 0x5a6   :  { %v370_v13 = vrot.slane %v367_v11, 7 }
 0x5a7   :  { %1608 = vrcp.f32 %v378_v16 }
 0x5a8   :  { %371 = vrot.lane.b32.xlu1 %v370_v13, %s1706_s3 }
 0x5b1   :  { %v1609_v19 = vpop.eup %1608 }
 0x60c   :  { %v384_v17 = vpop.permute.xlu0 %383 }
 0x60d   :  { %v386_v21 = vmul.f32 %v1609_v19, %v384_v17 }
 0x61a   :  { %v372_v18 = vpop.permute.xlu1 %371 }
 0x61b   :  { %v374_v20 = vsel %vm223_vm2, 0.0, %v372_v18 }
 0x61c   :  { %v388_v22 = vrot.slane %v374_v20, 4 }
 0x61e   :  { %v390_v25 = vadd.f32 %v388_v22, %v386_v21 }
 0x620   :  { %1610 = vtanh.f32 %v390_v25  ;;  %v408_v28 = vrot.slane %v390_v25, 3 }
 0x622   :  { %v410_v31 = vsel %vm223_vm2, %v405_v29, %v408_v28 }
 0x623   :  { %v411_v32 = vsel %vm403_vm3, %v410_v31, %v408_v28 }
 0x62a   :  { %v1611_v30 = vpop.eup %1610 }
 0x62b   :  { %393 = vrot.lane.b32.xlu1 %v1611_v30, %s1706_s3 }
 0x62f   :  { %518 = vrot.lane.b32.xlu1 %v411_v32, %s1707_s25  ;;  %v642_v32 = vrot.slane %v1777_v10, 1 }
 0x69d   :  { %v394_v33 = vpop.permute.xlu1 %393 }
 0x69e   :  { %v396_v34 = vmul.f32 %v1609_v19, %v394_v33 }
 0x6a0   :  { %v400_v36 = vrot.slane %v396_v34, 3 }
 0x6a1   :  { %v519_v0 = vpop.permute.xlu1 %518 }
 0x6a2   :  { %v402_v37 = vsel %vm223_vm2, %v397_v35, %v400_v36 }
 0x6a3   :  { %v404_v38 = vsel %vm403_vm3, %v402_v37, %v400_v36 }
 0x6a4   :  { %413 = vrot.lane.b32.xlu0 %v404_v38, %s1707_s25 }
 0x716   :  { %v414_v39 = vpop.permute.xlu0 %413 }
 0x717   :  { %1436 = vmatmul.mubr.msk.f32.vlgmr.msra.gmra.mrb[4].mxu1 %vm43_vm0, %v414_v39 }
 0x718   :  { %1542 = vmatpush3.bf16.msra.mxu1 %v1794_v24  ;;  %1457 = vmatprep.mubr.msk.f32.mxu1 %vm1704_vm1, %v1705_v26 }
 0x719   :  { %1543 = vmatprep.subr.bf16.mxu1 %v1703_v23 }
 0x71c   :  { %1545 = vmatpush3.bf16.msra.mxu1 %v1805_v27 }
 0x71d   :  { %1552 = vmatprep.subr.bf16.mxu1 %v1703_v23 }
 0x7ea   :  { %v483_v44 = vpop.f32.mrb[4].mxu1 }
 0x7eb   :  { %v488_v45 = vsel %vm487_vm4, %v483_v44, 0.0  ;;  %v508_v46 = vadd.f32 %v507_v43, %v483_v44  ;;  %v509_v47 = vadd.f32 %v483_v44, %v353_v60  ;;  %v1437_v48 = vpop.f32.mrb[5].mxu1  ;;  %v497_v57 = vrot.slane %v483_v44, 1 }
 0x7ec   :  { %v489_v49 = vrot.slane %v488_v45, 4 }
 0x7ed   :  { %v510_v50 = vsel %vm403_vm3, %v508_v46, %v509_v47 }
 0x7ee   :  { %v490_v51 = vadd.f32 %v489_v49, %v488_v45  ;;  %v1324_v52 = vmul.f32 -1.442695, %v510_v50 }
 0x7f0   :  { %v491_v53 = vrot.slane %v490_v51, 2  ;;  %1612 = vpow2.f32 %v1324_v52 }
 0x7f2   :  { %v492_v54 = vadd.f32 %v491_v53, %v490_v51 }
 0x7f4   :  { %v493_v55 = vrot.slane %v492_v54, 1 }
 0x7f6   :  { %v494_v56 = vadd.f32 %v493_v55, %v492_v54 }
 0x7f8   :  { %v499_v58 = vsel %vm223_vm2, %v494_v56, %v497_v57 }
 0x7f9   :  { %v501_v59 = vrot.slane %v499_v58, 2 }
 0x7fa   :  { %v1613_v61 = vpop.eup %1612 }
 0x7fb   :  { %v503_v62 = vadd.f32 %v501_v59, %v1779_v12  ;;  %v514_v63 = vadd.f32 1.0, %v1613_v61 }
 0x7fd   :  { %1614 = vrcp.f32 %v514_v63  ;;  %v1325_v14 = vmul.f32 -1.442695, %v503_v62 }
 0x7fe   :  { %1616 = vtanh.f32 %v503_v62 }
 0x7ff   :  { %1618 = vpow2.f32 %v1325_v14 }
 0x807   :  { %v1615_v60 = vpop.eup %1614 }
 0x808   :  { %v1617_v1 = vpop.eup %1616  ;;  %v521_v2 = vmul.f32 %v1615_v60, %v519_v0  ;;  %v768_v0 = vrot.slane %v1777_v10, 3 }
 0x809   :  { %543 = vrot.lane.b32.xlu0 %v1617_v1, %s1702_s18  ;;  %v1619_v15 = vpop.eup %1618 }
 0x80a   :  { %v523_v3 = vsel %vm522_vm5, %v521_v2, 0.0  ;;  %v532_v11 = vrot.slane %v521_v2, 1  ;;  %v538_v16 = vadd.f32 1.0, %v1619_v15 }
 0x80b   :  { %v524_v4 = vrot.slane %v523_v3, 4 }
 0x80c   :  { %1620 = vrcp.f32 %v538_v16 }
 0x80d   :  { %v525_v5 = vadd.f32 %v524_v4, %v523_v3 }
 0x80f   :  { %v526_v6 = vrot.slane %v525_v5, 2 }
 0x811   :  { %v527_v7 = vadd.f32 %v526_v6, %v525_v5 }
 0x813   :  { %v528_v8 = vrot.slane %v527_v7, 1 }
 0x815   :  { %v529_v9 = vadd.f32 %v528_v8, %v527_v7 }
 0x816   :  { %v1621_v18 = vpop.eup %1620 }
 0x817   :  { %v534_v12 = vsel %vm223_vm2, %v529_v9, %v532_v11 }
 0x818   :  { %v548_v13 = vrot.slane %v534_v12, 2 }
 0x81a   :  { %549 = vrot.lane.b32.xlu1 %v548_v13, %s1706_s3 }
 0x87b   :  { %v544_v17 = vpop.permute.xlu0 %543 }
 0x87c   :  { %v546_v19 = vmul.f32 %v1621_v18, %v544_v17 }
 0x88c   :  { %v550_v20 = vpop.permute.xlu1 %549 }
 0x88d   :  { %v1876_v21 = vadd.f32 %v550_v20, %v546_v19 }
 0x88f   :  { %1622 = vtanh.f32 %v1876_v21  ;;  %v652_v25 = vrot.slane %v1876_v21, 7 }
 0x899   :  { %v1623_v22 = vpop.eup %1622 }
 0x89a   :  { %555 = vrot.lane.b32.xlu0 %v1623_v22, %s1706_s3 }
 0x89e   :  { %653 = vrot.lane.b32.xlu0 %v652_v25, %s1707_s25 }
 0x90c   :  { %v556_v28 = vpop.permute.xlu0 %555 }
 0x90d   :  { %v1882_v29 = vmul.f32 %v1621_v18, %v556_v28 }
 0x90f   :  { %v560_v30 = vrot.slane %v1882_v29, 7 }
 0x910   :  { %v654_v46 = vpop.permute.xlu0 %653 }
 0x911   :  { %561 = vrot.lane.b32.xlu1 %v560_v30, %s1707_s25 }
 0x983   :  { %v562_v31 = vpop.permute.xlu1 %561 }
 0x984   :  { %1447 = vmatmul.mubr.msk.f32.vlgmr.msra.gmra.mrb[2].mxu0 %vm43_vm0, %v562_v31 }
 0x985   :  { %1548 = vmatpush3.bf16.msra.mxu0 %v1794_v24  ;;  %1468 = vmatprep.mubr.msk.f32.mxu0 %vm1704_vm1, %v1705_v26 }
 0x986   :  { %1549 = vmatprep.subr.bf16.mxu0 %v1703_v23 }
 0x989   :  { %1551 = vmatpush3.bf16.msra.mxu0 %v1805_v27 }
 0x98a   :  { %1558 = vmatprep.subr.bf16.mxu0 %v1703_v23 }
 0xa57   :  { %v631_v33 = vpop.f32.mrb[2].mxu0 }
 0xa58   :  { %v637_v34 = vrot.slane %v631_v33, 7  ;;  %v644_v35 = vadd.f32 %v642_v32, %v631_v33  ;;  %v1448_v36 = vpop.f32.mrb[3].mxu0 }
 0xa5a   :  { %v639_v37 = vsel %vm223_vm2, 0.0, %v637_v34  ;;  %v1327_v38 = vmul.f32 -1.442695, %v644_v35 }
 0xa5b   :  { %v640_v39 = vadd.f32 %v639_v37, %v1777_v10 }
 0xa5c   :  { %1624 = vpow2.f32 %v1327_v38 }
 0xa5d   :  { %1626 = vtanh.f32 %v640_v39  ;;  %v1328_v49 = vmul.f32 -1.442695, %v640_v39 }
 0xa66   :  { %v1625_v40 = vpop.eup %1624 }
 0xa67   :  { %v1627_v43 = vpop.eup %1626  ;;  %v648_v44 = vadd.f32 1.0, %v1625_v40 }
 0xa68   :  { %672 = vrot.lane.b32.xlu1 %v1627_v43, %s1702_s18  ;;  %v915_v43 = vsub.s32 4, %v1860_v41 }
 0xa69   :  { %1628 = vrcp.f32 %v648_v44 }
 0xa6a   :  { %1630 = vpow2.f32 %v1328_v49  ;;  %v916_v44 = vrot.slane %v1777_v10, %v915_v43 }
 0xa73   :  { %v1629_v45 = vpop.eup %1628 }
 0xa74   :  { %v656_v47 = vmul.f32 %v1629_v45, %v654_v46  ;;  %v1631_v50 = vpop.eup %1630 }
 0xa75   :  { %v667_v51 = vadd.f32 1.0, %v1631_v50 }
 0xa76   :  { %v659_v48 = vrot.slane %v656_v47, 7 }
 0xa77   :  { %1632 = vrcp.f32 %v667_v51 }
 0xa78   :  { %660 = vrot.lane.b32.xlu0 %v659_v48, %s1706_s3 }
 0xa81   :  { %v1633_v53 = vpop.eup %1632 }
 0xada   :  { %v673_v52 = vpop.permute.xlu1 %672 }
 0xadb   :  { %v675_v54 = vmul.f32 %v1633_v53, %v673_v52 }
 0xaea   :  { %v661_v55 = vpop.permute.xlu0 %660 }
 0xaeb   :  { %v663_v56 = vsel %vm223_vm2, 0.0, %v661_v55 }
 0xaec   :  { %v676_v57 = vadd.f32 %v675_v54, %v663_v56 }
 0xaee   :  { %1634 = vtanh.f32 %v676_v57  ;;  %v778_v59 = vrot.slane %v676_v57, 1 }
 0xaf8   :  { %v1635_v58 = vpop.eup %1634 }
 0xaf9   :  { %679 = vrot.lane.b32.xlu1 %v1635_v58, %s1706_s3 }
 0xafd   :  { %779 = vrot.lane.b32.xlu1 %v778_v59, %s1707_s25 }
 0xb6b   :  { %v680_v61 = vpop.permute.xlu1 %679 }
 0xb6c   :  { %v682_v62 = vmul.f32 %v1633_v53, %v680_v61 }
 0xb6e   :  { %v684_v63 = vrot.slane %v682_v62, 1 }
 0xb6f   :  { %v780_v12 = vpop.permute.xlu1 %779 }
 0xb70   :  { %685 = vrot.lane.b32.xlu0 %v684_v63, %s1707_s25 }
 0xbe2   :  { %v686_v60 = vpop.permute.xlu0 %685 }
 0xbe3   :  { %1458 = vmatmul.mubr.msk.f32.vlgmr.msra.gmra.mrb[6].mxu1 %vm43_vm0, %v686_v60 }
 0xbe4   :  { %1554 = vmatpush3.bf16.msra.mxu1 %v1794_v24  ;;  %1479 = vmatprep.mubr.msk.f32.mxu1 %vm1704_vm1, %v1705_v26 }
 0xbe5   :  { %1555 = vmatprep.subr.bf16.mxu1 %v1703_v23 }
 0xbe8   :  { %1557 = vmatpush3.bf16.msra.mxu1 %v1805_v27 }
 0xbe9   :  { %1570 = vmatprep.subr.bf16.mxu1 %v1703_v23 }
 0xcb6   :  { %v755_v1 = vpop.f32.mrb[6].mxu1 }
 0xcb7   :  { %v761_v2 = vrot.slane %v755_v1, 7  ;;  %v770_v3 = vadd.f32 %v768_v0, %v755_v1  ;;  %v1459_v4 = vpop.f32.mrb[7].mxu1 }
 0xcb9   :  { %v763_v5 = vsel %vm223_vm2, 0.0, %v761_v2  ;;  %v1330_v6 = vmul.f32 -1.442695, %v770_v3 }
 0xcba   :  { %v765_v7 = vrot.slane %v763_v5, 6 }
 0xcbb   :  { %1636 = vpow2.f32 %v1330_v6 }
 0xcbc   :  { %v767_v24 = vadd.f32 %v765_v7, %v1777_v10 }
 0xcbe   :  { %1638 = vtanh.f32 %v767_v24  ;;  %v1331_v15 = vmul.f32 -1.442695, %v767_v24 }
 0xcc5   :  { %v1637_v8 = vpop.eup %1636 }
 0xcc6   :  { %v774_v9 = vadd.f32 1.0, %v1637_v8 }
 0xcc8   :  { %v1639_v11 = vpop.eup %1638  ;;  %1640 = vrcp.f32 %v774_v9 }
 0xcc9   :  { %798 = vrot.lane.b32.xlu1 %v1639_v11, %s1702_s18  ;;  %1642 = vpow2.f32 %v1331_v15 }
 0xcd2   :  { %v1641_v27 = vpop.eup %1640 }
 0xcd3   :  { %v782_v13 = vmul.f32 %v1641_v27, %v780_v12  ;;  %v1643_v16 = vpop.eup %1642 }
 0xcd4   :  { %v793_v17 = vadd.f32 1.0, %v1643_v16 }
 0xcd5   :  { %v785_v14 = vrot.slane %v782_v13, 7 }
 0xcd6   :  { %1644 = vrcp.f32 %v793_v17 }
 0xcd7   :  { %786 = vrot.lane.b32.xlu0 %v785_v14, %s1706_s3 }
 0xce0   :  { %v1645_v20 = vpop.eup %1644 }
 0xd3b   :  { %v799_v18 = vpop.permute.xlu1 %798 }
 0xd3c   :  { %v801_v25 = vmul.f32 %v1645_v20, %v799_v18 }
 0xd49   :  { %v787_v19 = vpop.permute.xlu0 %786 }
 0xd4a   :  { %v789_v22 = vsel %vm223_vm2, 0.0, %v787_v19 }
 0xd4b   :  { %v803_v28 = vrot.slane %v789_v22, 6 }
 0xd4d   :  { %v805_v30 = vadd.f32 %v803_v28, %v801_v25  ;;  %v973_v28 = vrot.slane %v1876_v21, 6  ;;  %v1069_v21 = vrot.slane %v1777_v10, %v506_v42 }
 0xd4f   :  { %1646 = vtanh.f32 %v805_v30  ;;  %v818_v31 = vrot.slane %v805_v30, 1 }
 0xd51   :  { %v820_v33 = vsel %vm223_vm2, %v676_v57, %v818_v31 }
 0xd52   :  { %v821_v34 = vsel %vm403_vm3, %v820_v33, %v818_v31  ;;  %v967_v33 = vrot.slane %v1882_v29, 6 }
 0xd59   :  { %v1647_v32 = vpop.eup %1646 }
 0xd5a   :  { %808 = vrot.lane.b32.xlu0 %v1647_v32, %s1706_s3 }
 0xd5e   :  { %927 = vrot.lane.b32.xlu0 %v821_v34, %s1707_s25 }
 0xdcc   :  { %v809_v35 = vpop.permute.xlu0 %808 }
 0xdcd   :  { %v811_v36 = vmul.f32 %v1645_v20, %v809_v35 }
 0xdcf   :  { %v813_v37 = vrot.slane %v811_v36, 1 }
 0xdd0   :  { %v928_v1 = vpop.permute.xlu0 %927 }
 0xdd1   :  { %v815_v38 = vsel %vm223_vm2, %v682_v62, %v813_v37 }
 0xdd2   :  { %v816_v39 = vsel %vm403_vm3, %v815_v38, %v813_v37 }
 0xdd3   :  { %823 = vrot.lane.b32.xlu1 %v816_v39, %s1707_s25 }
 0xe45   :  { %v824_v40 = vpop.permute.xlu1 %823 }
 0xe46   :  { %1469 = vmatmul.mubr.msk.f32.vlgmr.msra.gmra.mrb[4].mxu0 %vm43_vm0, %v824_v40 }
 0xe47   :  { %1498 = vmatprep.mubr.msk.f32.mxu0 %vm1704_vm1, %v1705_v26 }
 0xf19   :  { %v893_v45 = vpop.f32.mrb[4].mxu0 }
 0xf1a   :  { %v897_v46 = vsel %vm487_vm4, %v893_v45, 0.0  ;;  %v917_v47 = vadd.f32 %v916_v44, %v893_v45  ;;  %v918_v48 = vadd.f32 %v893_v45, %v768_v0  ;;  %v1470_v49 = vpop.f32.mrb[5].mxu0  ;;  %v906_v58 = vrot.slane %v893_v45, 1 }
 0xf1b   :  { %v898_v50 = vrot.slane %v897_v46, 4 }
 0xf1c   :  { %v919_v51 = vsel %vm403_vm3, %v917_v47, %v918_v48 }
 0xf1d   :  { %v899_v52 = vadd.f32 %v898_v50, %v897_v46  ;;  %v1333_v53 = vmul.f32 -1.442695, %v919_v51 }
 0xf1f   :  { %v900_v54 = vrot.slane %v899_v52, 2  ;;  %1648 = vpow2.f32 %v1333_v53 }
 0xf21   :  { %v901_v55 = vadd.f32 %v900_v54, %v899_v52 }
 0xf23   :  { %v902_v56 = vrot.slane %v901_v55, 1 }
 0xf25   :  { %v903_v57 = vadd.f32 %v902_v56, %v901_v55 }
 0xf27   :  { %v908_v59 = vsel %vm223_vm2, %v903_v57, %v906_v58 }
 0xf28   :  { %v910_v61 = vrot.slane %v908_v59, 4 }
 0xf29   :  { %v1649_v62 = vpop.eup %1648 }
 0xf2a   :  { %v912_v63 = vadd.f32 %v910_v61, %v1777_v10  ;;  %v923_v60 = vadd.f32 1.0, %v1649_v62  ;;  %v1118_v62 = vld [vmem:[%s2020_s4] sm:$0xff] }
 0xf2c   :  { %1650 = vrcp.f32 %v923_v60  ;;  %v1334_v13 = vmul.f32 -1.442695, %v912_v63 }
 0xf2d   :  { %1652 = vtanh.f32 %v912_v63  ;;  %v1120_v63 = vld [vmem:[%s2020_s4 + $0x10] sm:$0xff] }
 0xf2e   :  { %1654 = vpow2.f32 %v1334_v13 }
 0xf36   :  { %v1651_v0 = vpop.eup %1650 }
 0xf37   :  { %v1653_v2 = vpop.eup %1652  ;;  %v930_v3 = vmul.f32 %v1651_v0, %v928_v1  ;;  %v1121_v0 = vld [vmem:[%s2020_s4 + $0x18] sm:$0xff] }
 0xf38   :  { %951 = vrot.lane.b32.xlu1 %v1653_v2, %s1702_s18  ;;  %v1655_v14 = vpop.eup %1654  ;;  %v1562_v2 = vpack.c.bf16 %v1121_v0, %v1120_v63 }
 0xf39   :  { %v931_v4 = vsel %vm522_vm5, %v930_v3, 0.0  ;;  %v940_v11 = vrot.slane %v930_v3, 1  ;;  %v946_v15 = vadd.f32 1.0, %v1655_v14 }
 0xf3a   :  { %v932_v5 = vrot.slane %v931_v4, 4 }
 0xf3b   :  { %1656 = vrcp.f32 %v946_v15 }
 0xf3c   :  { %v933_v6 = vadd.f32 %v932_v5, %v931_v4  ;;  %v1122_v4 = vld [vmem:[%s2020_s4 + $0x20] sm:$0xff]  ;;  %v1123_v5 = vld [vmem:[%s2020_s4 + $0x28] sm:$0xff] }
 0xf3e   :  { %v934_v7 = vrot.slane %v933_v6, 2 }
 0xf40   :  { %v935_v24 = vadd.f32 %v934_v7, %v933_v6  ;;  %v1565_v7 = vpack.c.bf16 %v1123_v5, %v1122_v4 }
 0xf42   :  { %v936_v8 = vrot.slane %v935_v24, 1 }
 0xf44   :  { %v937_v9 = vadd.f32 %v936_v8, %v935_v24 }
 0xf45   :  { %v1657_v17 = vpop.eup %1656 }
 0xf46   :  { %v942_v27 = vsel %vm223_vm2, %v937_v9, %v940_v11  ;;  %v1124_v11 = vld [vmem:[%s2020_s4 + $0x30] sm:$0xff] }
 0xf47   :  { %v956_v12 = vrot.slane %v942_v27, 4  ;;  %v1125_v27 = vld [vmem:[%s2020_s4 + $0x38] sm:$0xff] }
 0xf49   :  { %957 = vrot.lane.b32.xlu0 %v956_v12, %s1706_s3  ;;  %v1568_v12 = vpack.c.bf16 %v1125_v27, %v1124_v11 }
 0xfaa   :  { %v952_v16 = vpop.permute.xlu1 %951 }
 0xfab   :  { %v954_v18 = vmul.f32 %v1657_v17, %v952_v16 }
 0xfbb   :  { %v958_v19 = vpop.permute.xlu0 %957 }
 0xfbc   :  { %v1935_v20 = vadd.f32 %v958_v19, %v954_v18 }
 0xfbe   :  { %1658 = vtanh.f32 %v1935_v20  ;;  %v976_v25 = vrot.slane %v1935_v20, 3 }
 0xfc0   :  { %v978_v30 = vsel %vm223_vm2, %v973_v28, %v976_v25 }
 0xfc8   :  { %v1659_v22 = vpop.eup %1658 }
 0xfc9   :  { %963 = vrot.lane.b32.xlu1 %v1659_v22, %s1706_s3 }
 0xfcd   :  { %1078 = vrot.lane.b32.xlu1 %v978_v30, %s1707_s25 }
0x103b   :  { %v964_v31 = vpop.permute.xlu1 %963 }
0x103c   :  { %v966_v32 = vmul.f32 %v1657_v17, %v964_v31  ;;  %v1208_v31 = vld [vmem:[%s2022_s6] sm:$0xff] }
0x103e   :  { %v970_v34 = vrot.slane %v966_v32, 3 }
0x103f   :  { %v1079_v52 = vpop.permute.xlu1 %1078 }
0x1040   :  { %v972_v35 = vsel %vm223_vm2, %v967_v33, %v970_v34  ;;  %v1126_v33 = vld [vmem:[%s2021_s5] sm:$0x1]  ;;  %s1708_s5 = smov [#allocation2]  }
0x1041   :  { %980 = vrot.lane.b32.xlu0 %v972_v35, %s1707_s25 }
0x10b3   :  { %v981_v36 = vpop.permute.xlu0 %980 }
0x10b4   :  { %1480 = vmatmul.mubr.msk.f32.vlgmr.msra.gmra.mrb[8].mxu1 %vm43_vm0, %v981_v36 }
0x10b5   :  { %1505 = vmatprep.mubr.msk.f32.mxu1 %vm1704_vm1, %v1705_v26 }
0x1187   :  { %v1050_v37 = vpop.f32.mrb[8].mxu1 }
0x1188   :  { %v1054_v38 = vsel %vm487_vm4, %v1050_v37, 0.0  ;;  %v1070_v39 = vadd.f32 %v1069_v21, %v1050_v37  ;;  %v1481_v29 = vpop.f32.mrb[9].mxu1 }
0x1189   :  { %v1055_v40 = vrot.slane %v1054_v38, 4  ;;  %v1210_v29 = vld [vmem:[%s2023_s7] sm:$0x1] }
0x118a   :  { %v1336_v43 = vmul.f32 -1.442695, %v1070_v39 }
0x118b   :  { %v1056_v44 = vadd.f32 %v1055_v40, %v1054_v38 }
0x118c   :  { %1660 = vpow2.f32 %v1336_v43 }
0x118d   :  { %v1057_v45 = vrot.slane %v1056_v44, 2 }
0x118f   :  { %v1058_v46 = vadd.f32 %v1057_v45, %v1056_v44 }
0x1191   :  { %v1059_v47 = vrot.slane %v1058_v46, 1 }
0x1193   :  { %v1060_v48 = vadd.f32 %v1059_v47, %v1058_v46 }
0x1195   :  { %v1061_v49 = vsel %vm223_vm2, %v1060_v48, 0.0 }
0x1196   :  { %v1661_v26 = vpop.eup %1660  ;;  %v1063_v50 = vrot.slane %v1061_v49, 2 }
0x1197   :  { %v1074_v41 = vadd.f32 1.0, %v1661_v26 }
0x1198   :  { %v1065_v42 = vadd.f32 %v1063_v50, %v1777_v10  ;;  %v1119_v10 = vld [vmem:[%s2020_s4 + $0x8] sm:$0xff] }
0x1199   :  { %1662 = vrcp.f32 %v1074_v41  ;;  %v1559_v60 = vpack.c.bf16 %v1119_v10, %v1118_v62 }
0x119a   :  { %1664 = vtanh.f32 %v1065_v42  ;;  %v1337_v24 = vmul.f32 -1.442695, %v1065_v42 }
0x119b   :  { %1560 = vmatpush3.bf16.msra.mxu0 %v1559_v60 }
0x119c   :  { %1561 = vmatprep.subr.bf16.mxu0 %v1703_v23  ;;  %1666 = vpow2.f32 %v1337_v24 }
0x119f   :  { %1563 = vmatpush3.bf16.msra.mxu0 %v1562_v2 }
0x11a0   :  { %1564 = vmatprep.subr.bf16.mxu0 %v1703_v23 }
0x11a3   :  { %v1663_v51 = vpop.eup %1662  ;;  %1566 = vmatpush3.bf16.msra.mxu0 %v1565_v7 }
0x11a4   :  { %v1665_v53 = vpop.eup %1664  ;;  %v1081_v54 = vmul.f32 %v1663_v51, %v1079_v52  ;;  %1567 = vmatprep.subr.bf16.mxu0 %v1703_v23  ;;  %v1108_v23 = vrot.slane %v1935_v20, 7  ;;  %v1209_v20 = vld [vmem:[%s2022_s6 + $0x8] sm:$0xff]  ;;  %s1305_s6 = sshll.u32 %s1708_s5, 4  ;;  %s1306_s6 = int_to_ptr.vmem [resolvable:$true] %s1305_s6 }
0x11a5   :  { %1098 = vrot.lane.b32.xlu0 %v1665_v53, %s1702_s18  ;;  %v1571_v32 = vpack.c.bf16 %v1209_v20, %v1208_v31  ;;  %s1678_s7 = scalar_lea.vmem %s1306_s6, 16  ;;  %s1682_s24 = scalar_lea.vmem %s1306_s6, 32 }
0x11a6   :  { %v1082_v55 = vsel %vm522_vm5, %v1081_v54, 0.0  ;;  %v1667_v8 = vpop.eup %1666  ;;  %p1679_p0 = scmp.ne.s32.totalorder %s1306_s6, %s1678_s7  ;;  %p1683_p1 = scmp.lt.s32.totalorder %s1306_s6, %s1306_s6 }
0x11a7   :  { %v1083_v56 = vrot.slane %v1082_v55, 4  ;;  %v1093_v9 = vadd.f32 1.0, %v1667_v8  ;;  %1569 = vmatpush3.bf16.msra.mxu0 %v1568_v12  ;;  %1572 = vmatpush3.bf16.msra.mxu1 %v1571_v32  ;;  %p1684_p2 = scmp.lt.s32.totalorder %s1682_s24, %s1678_s7 }
0x11a9   :  { %v1084_v57 = vadd.f32 %v1083_v56, %v1082_v55  ;;  %1668 = vrcp.f32 %v1093_v9  ;;  %p1685_p3 = por %p1684_p2, %p1683_p1 }
0x11ab   :  { %v1085_v58 = vrot.slane %v1084_v57, 2  ;;  %p1686_p4 = pnand %p1685_p3, %p1679_p0 }
0x11ad   :  { %v1086_v59 = vadd.f32 %v1085_v58, %v1084_v57 }
0x11af   :  { %v1087_v61 = vrot.slane %v1086_v59, 1 }
0x11b1   :  { %v1088_v1 = vadd.f32 %v1087_v61, %v1086_v59 }
0x11b3   :  { %v1089_v3 = vsel %vm223_vm2, %v1088_v1, 0.0  ;;  %v1669_v14 = vpop.eup %1668 }
0x11b4   :  { %v1103_v6 = vrot.slane %v1089_v3, 2 }
0x11b6   :  { %1104 = vrot.lane.b32.xlu1 %v1103_v6, %s1706_s3 }
0x1217   :  { %v1099_v13 = vpop.permute.xlu0 %1098 }
0x1218   :  { %v1101_v15 = vmul.f32 %v1669_v14, %v1099_v13 }
0x1228   :  { %v1105_v16 = vpop.permute.xlu1 %1104 }
0x1229   :  { %v1107_v17 = vadd.f32 %v1105_v16, %v1101_v15 }
0x122b   :  { %v1110_v18 = vmul.f32 %v1108_v23, %v1107_v17  ;;  %v1111_v19 = vsub.f32 %v1107_v17, %v1108_v23 }
0x122d   :  { %v1112_v22 = vand.u32 2147483647, %v1111_v19 }
0x122f   :  { %1114 = vrot.lane.b32.xlu0 %v1112_v22, %s1706_s3 }
0x12a1   :  { %v1115_v25 = vpop.permute.xlu0 %1114 }
0x12a2   :  { %v1117_v28 = vsel %vm43_vm0, %v1110_v18, %v1115_v25 }
0x12a3   :  { %v1128_v30 = vrot.slane %v1117_v28, 6 }
0x12a5   :  { %1499 = vmatmul.mubr.msk.f32.vlgmr.msra.gmra.mrb[6].mxu0 %vm1129_vm6, %v1128_v30 }
0x1378   :  { %v1198_v34 = vpop.f32.mrb[6].mxu0 }
0x1379   :  { %v1199_v35 = vadd.f32 %v1198_v34, %v1126_v33  ;;  %v1500_v36 = vpop.f32.mrb[7].mxu0 }
0x137b   :  { %v1339_v21 = vmul.f32 -1.442695, %v1199_v35 }
0x137d   :  { %1670 = vpow2.f32 %v1339_v21 }
0x1387   :  { %v1671_v37 = vpop.eup %1670 }
0x1388   :  { %v1205_v38 = vadd.f32 1.0, %v1671_v37 }
0x138a   :  { %1672 = vrcp.f32 %v1205_v38 }
0x1394   :  { %v1673_v39 = vpop.eup %1672 }
0x1395   :  { %1506 = vmatmul.mubr.msk.f32.vlgmr.msra.gmra.mrb[10].mxu1 %vm1211_vm7, %v1673_v39 }
0x1468   :  { %v1281_v40 = vpop.f32.mrb[10].mxu1 }
0x1469   :  { %v1282_v43 = vadd.f32 %v1281_v40, %v1210_v29  ;;  %v1507_v44 = vpop.f32.mrb[11].mxu1 }
0x146b   :  { %v1286_v45 = vsel %vm1285_vm8, %v1282_v43, -inf }
0x146c   :  { %1287 = vmax.xlane.f32.xlu1 %v1286_v45 }
0x14f9   :  { %v1288_v46 = vpop.xlane.xlu1 %1287 }
0x14fa   :  { %v1289_v47 = vsub.f32 %v1282_v43, %v1288_v46 }
0x14fc   :  { %v1290_v48 = vmul.f32 1.442695, %v1289_v47 }
0x14fe   :  { %1674 = vpow2.f32 %v1290_v48 }
0x1508   :  { %v1675_v49 = vpop.eup %1674 }
0x1509   :  { %v1292_v26 = vsel %vm1285_vm8, %v1675_v49, 0.0 }
0x150a   :  { %1293 = vadd.xlane.f32.xlu0 %v1292_v26 }
0x1597   :  { %v1294_v50 = vpop.xlane.xlu0 %1293 }
0x1598   :  { %1676 = vlog2.f32 %v1294_v50 }
0x15a2   :  { %v1677_v41 = vpop.eup %1676 }
0x15a3   :  { %v1296_v42 = vmul.f32 0.6931472, %v1677_v41 }
0x15a5   :  { %v1297_v51 = vsub.f32 %v1289_v47, %v1296_v42 }
0x15a7   :  { %1298 = vst.msk [vmem:[#allocation2] sm:$0x1] %vm1285_vm8, %v1297_v51 }
0x15a8   :  { %1689 = shalt.err (!%p1686_p4)
}
0x15a9   :  { %s1690_s26 = scalar_lea.hbm %s2024_s8, 16 }
0x15aa   :  { %p1691_p5 = scmp.ne.s32.totalorder %s2024_s8, %s1690_s26  ;;  %p1694_p6 = scmp.lt.u32.totalorder %s1690_s26, %s2024_s8 }
0x15ac   :  { %p1696_p7 = pnand %p1694_p6, %p1691_p5 }
0x15ae   :  { %1699 = shalt.err (!%p1696_p7)
}
0x15af   :  { %1308 = dma.vmem_to_hbm [thread:$0]  %s1306_s6, 16, %s2024_s8, [#allocation3]  }
0x15b0   :  { %1700 = dma.done.wait [#allocation3], 16  }
0x15b1   :  { %1701 = vsyncadd [#allocation3], 4294967280 }
0x15b2   :  { %1312 = vsyncpa [#allocation3], 1 }

</bundles_post_ra>
